<compile_context>
chip_gen: v7x
topology: tpu7x:2x2x1
jax: 0.10.0
libtpu: 0.0.40
codegen_flags: <defaults>
</compile_context>

<pallas_src>
import functools

import jax
import jax.numpy as jnp
from jax.experimental import pallas as pl
from jax.experimental.pallas import tpu as pltpu


def _round_up(x, m):
    return ((x + m - 1) // m) * m


def edge_mlp_kernel(xs_ref, xd_ref, ea_ref, xu_ref,
                    w1s_ref, w1d_ref, w1e_ref, w1u_ref, b1_ref,
                    w2_ref, b2_ref, o_ref):
    # Lane-packed tiles: xs/xd/ea/xu: (T, P*d_*); w1*_blk: (P*d_*, P*H);
    # b1: (1, P*H); w2_blk: (P*H, P*D_out); b2: (1, P*D_out); o: (T, P*D_out).
    f32 = jnp.float32
    h = jnp.dot(xs_ref[...], w1s_ref[...], preferred_element_type=f32)
    h = h + jnp.dot(xd_ref[...], w1d_ref[...], preferred_element_type=f32)
    h = h + jnp.dot(ea_ref[...], w1e_ref[...], preferred_element_type=f32)
    h = h + jnp.dot(xu_ref[...], w1u_ref[...], preferred_element_type=f32)
    h = jnp.maximum(h + b1_ref[...].astype(f32), 0.0)
    o = jnp.dot(h.astype(w2_ref.dtype), w2_ref[...],
                preferred_element_type=f32) + b2_ref[...].astype(f32)
    o_ref[...] = o.astype(o_ref.dtype)


def edge_model_forward(src_x, dest_x, edge_attr, u, src_batch, params, *,
                       pack=32, tile_edges=16384):
    """Pallas implementation of EdgeModel.forward (lane-packed layout)."""
    w1, b1, w2, b2 = params

    E = src_x.shape[0]
    d_src, d_dst, d_edge = src_x.shape[1], dest_x.shape[1], edge_attr.shape[1]
    num_graphs, d_glob = u.shape
    D_in = d_src + d_dst + d_edge + d_glob
    assert w1.shape[0] == D_in, (w1.shape, D_in)
    H = w1.shape[1]
    D_out = w2.shape[1]
    out_dtype = src_x.dtype  # keep f32 semantics of the PyTorch module

    # W1 row-slices matching the cat([src.x, dest.x, edge_attr, u[batch]]) order.
    w1_s = w1[:d_src]
    w1_d = w1[d_src:d_src + d_dst]
    w1_e = w1[d_src + d_dst:d_src + d_dst + d_edge]
    w1_u = w1[d_src + d_dst + d_edge:]

    # Global-feature path.  Small num_graphs: stream one_hot(batch) (NG floats
    # per edge) and fold the gather into a dot against (u @ W1_u).  Large
    # num_graphs: gather u per edge in the wrapper so the per-edge stream stays
    # d_glob wide instead of num_graphs wide.
    # NOTE: out-of-range batch ids give an all-zero one_hot row, so only the u
    # contribution is dropped (b1 is added explicitly below); PyTorch would raise.
    if num_graphs <= max(8, 2 * d_glob):
        feat_u = jax.nn.one_hot(src_batch, num_graphs, dtype=out_dtype)  # (E, NG)
        w_u = u.astype(w1.dtype) @ w1_u                                  # (NG, H)
    else:
        feat_u = u[src_batch].astype(out_dtype)                          # (E, d_glob)
        w_u = w1_u
    d_u = feat_u.shape[1]

    # Lane packing: P consecutive edges per row (free row-major reshape).
    P = max(1, int(pack))
    E_pad = _round_up(E, P)
    pad = E_pad - E
    if pad:
        zrow = ((0, pad), (0, 0))
        src_x = jnp.pad(src_x, zrow)
        dest_x = jnp.pad(dest_x, zrow)
        edge_attr = jnp.pad(edge_attr, zrow)
        feat_u = jnp.pad(feat_u, zrow)
    rows = E_pad // P

    xs = src_x.reshape(rows, P * d_src)       # (rows, 128) for d_src=4, P=32
    xd = dest_x.reshape(rows, P * d_dst)
    ea = edge_attr.reshape(rows, P * d_edge)
    xu = feat_u.reshape(rows, P * d_u)

    # Block-diagonal weight expansion (tiny, built once per call).
    eye = jnp.eye(P, dtype=w1.dtype)
    w1s_blk = jnp.kron(eye, w1_s)             # (P*d_src, P*H)
    w1d_blk = jnp.kron(eye, w1_d)
    w1e_blk = jnp.kron(eye, w1_e)
    w1u_blk = jnp.kron(eye, w_u)              # (P*d_u,  P*H)
    w2_blk = jnp.kron(eye, w2)                # (P*H,    P*D_out)
    b1_blk = jnp.tile(b1, P).reshape(1, P * H)
    b2_blk = jnp.tile(b2, P).reshape(1, P * D_out)

    # Tiling: big tiles (>= ~16K edges/step) to beat the ~0.35us/step overhead,
    # but capped at ceil(rows/2) so there are >=2 grid steps when possible and
    # v7x's second TensorCore gets a share of the "parallel" axis.
    tile_rows_target = max(8, _round_up(max(1, tile_edges // P), 8))
    if rows <= 8:
        tile_rows = rows
    else:
        tile_rows = min(tile_rows_target, _round_up(pl.cdiv(rows, 2), 8))
    grid = (pl.cdiv(rows, tile_rows),)

    # Generation-aware VMEM budget (v7x: 64 MiB physical; v5e/v6e: 128 MiB).
    try:
        vmem_cap = pltpu.get_tpu_info().vmem_capacity_bytes
    except Exception:
        vmem_cap = 64 * 1024 * 1024
    vmem_limit = max(32 * 1024 * 1024,
                     min(int(vmem_cap) * 3 // 4, 112 * 1024 * 1024))

    edge_map = lambda i: (i, 0)
    const_map = lambda i: (0, 0)

    out_packed = pl.pallas_call(
        edge_mlp_kernel,
        out_shape=jax.ShapeDtypeStruct((rows, P * D_out), out_dtype),
        grid_spec=pltpu.PrefetchScalarGridSpec(
            num_scalar_prefetch=0,
            grid=grid,
            in_specs=[
                pl.BlockSpec((tile_rows, P * d_src), edge_map),   # packed src.x
                pl.BlockSpec((tile_rows, P * d_dst), edge_map),   # packed dest.x
                pl.BlockSpec((tile_rows, P * d_edge), edge_map),  # packed edge_attr
                pl.BlockSpec((tile_rows, P * d_u), edge_map),     # packed u-feature
                pl.BlockSpec((P * d_src, P * H), const_map),      # blockdiag W1_src
                pl.BlockSpec((P * d_dst, P * H), const_map),      # blockdiag W1_dst
                pl.BlockSpec((P * d_edge, P * H), const_map),     # blockdiag W1_edge
                pl.BlockSpec((P * d_u, P * H), const_map),        # blockdiag W1_u-path
                pl.BlockSpec((1, P * H), const_map),              # tiled b1
                pl.BlockSpec((P * H, P * D_out), const_map),      # blockdiag W2
                pl.BlockSpec((1, P * D_out), const_map),          # tiled b2
            ],
            out_specs=pl.BlockSpec((tile_rows, P * D_out), edge_map),
        ),
        compiler_params=pltpu.CompilerParams(
            dimension_semantics=("parallel",),
            vmem_limit_bytes=vmem_limit,
        ),
    )(xs, xd, ea, xu,
      w1s_blk, w1d_blk, w1e_blk, w1u_blk, b1_blk, w2_blk, b2_blk)

    out = out_packed.reshape(E_pad, D_out)     # free row-major un-pack
    return out[:E] if pad else out


def init_params(key, d_in, hidden_dim, d_out):
    """Deterministic PyTorch-Linear-style init (uniform +/- 1/sqrt(fan_in))."""
    k1, k2, k3, k4 = jax.random.split(key, 4)
    lim1 = 1.0 / jnp.sqrt(d_in)
    lim2 = 1.0 / jnp.sqrt(hidden_dim)
    w1 = jax.random.uniform(k1, (d_in, hidden_dim), jnp.float32, -lim1, lim1)
    b1 = jax.random.uniform(k2, (hidden_dim,), jnp.float32, -lim1, lim1)
    w2 = jax.random.uniform(k3, (hidden_dim, d_out), jnp.float32, -lim2, lim2)
    b2 = jax.random.uniform(k4, (d_out,), jnp.float32, -lim2, lim2)
    return w1, b1, w2, b2


def reference_forward(src_x, dest_x, edge_attr, u, src_batch, params):
    w1, b1, w2, b2 = params
    combined = jnp.concatenate(
        [src_x, dest_x, edge_attr, u[src_batch]], axis=1)
    h = jnp.maximum(combined @ w1 + b1, 0.0)
    return h @ w2 + b2


if __name__ == "__main__":
    # EdgeModel(edge_in_dim=4, node_in_dim=8, global_in_dim=4,
    #           edge_out_dim=8, hidden_dim=32); per-endpoint node dim = 4.
    num_edges = 16
    num_graphs = 2
    d_node = 4
    edge_in_dim = 4
    node_in_dim = 2 * d_node
    global_in_dim = 4
    hidden_dim = 32
    edge_out_dim = 8
    d_in = edge_in_dim + node_in_dim + global_in_dim  # 16

    key = jax.random.PRNGKey(0)
    k_sx, k_dx, k_ea, k_u, k_b, k_p = jax.random.split(key, 6)

    src_x = jax.random.normal(k_sx, (num_edges, d_node), jnp.float32)
    dest_x = jax.random.normal(k_dx, (num_edges, d_node), jnp.float32)
    edge_attr = jax.random.normal(k_ea, (num_edges, edge_in_dim), jnp.float32)
    u = jax.random.normal(k_u, (num_graphs, global_in_dim), jnp.float32)
    src_batch = jax.random.randint(k_b, (num_edges,), 0, num_graphs, jnp.int32)

    params = init_params(k_p, d_in, hidden_dim, edge_out_dim)

    fwd = jax.jit(functools.partial(edge_model_forward, pack=32,
                                    tile_edges=16384))
    out = fwd(src_x, dest_x, edge_attr, u, src_batch, params)
    out = jax.block_until_ready(out)

    ref = reference_forward(src_x, dest_x, edge_attr, u, src_batch, params)
    assert out.shape == (num_edges, edge_out_dim)
    # block-diagonal / split-matmul accumulation order differs slightly from
    # the fused reference
    assert jnp.allclose(out, ref, atol=1e-4, rtol=1e-4)

    print("KERNEL_OK")
</pallas_src>

<mosaic_0001>
module attributes {stable_mosaic.version = 11 : i64} {
  func.func @edge_mlp_kernel(%arg0: i32, %arg1: memref<1x128xf32, #tpu.memory_space<vmem>>, %arg2: memref<1x128xf32, #tpu.memory_space<vmem>>, %arg3: memref<1x128xf32, #tpu.memory_space<vmem>>, %arg4: memref<1x64xf32, #tpu.memory_space<vmem>>, %arg5: memref<128x1024xf32, #tpu.memory_space<vmem>>, %arg6: memref<128x1024xf32, #tpu.memory_space<vmem>>, %arg7: memref<128x1024xf32, #tpu.memory_space<vmem>>, %arg8: memref<64x1024xf32, #tpu.memory_space<vmem>>, %arg9: memref<1x1024xf32, #tpu.memory_space<vmem>>, %arg10: memref<1024x256xf32, #tpu.memory_space<vmem>>, %arg11: memref<1x256xf32, #tpu.memory_space<vmem>>, %arg12: memref<1x256xf32, #tpu.memory_space<vmem>>) attributes {dimension_semantics = [#tpu.dimension_semantics<parallel>], iteration_bounds = array<i64: 1>, scalar_prefetch = 0 : i64, scratch_operands = 0 : i64, tpu.core_type = #tpu.core_type<tc>, window_params = [{transform_indices = @transform_0, window_bounds = array<i64: 1, 128>}, {transform_indices = @transform_1, window_bounds = array<i64: 1, 128>}, {transform_indices = @transform_2, window_bounds = array<i64: 1, 128>}, {transform_indices = @transform_3, window_bounds = array<i64: 1, 64>}, {pipeline_mode = #tpu.pipeline_mode<synchronous>, transform_indices = @transform_4, window_bounds = array<i64: 128, 1024>}, {pipeline_mode = #tpu.pipeline_mode<synchronous>, transform_indices = @transform_5, window_bounds = array<i64: 128, 1024>}, {pipeline_mode = #tpu.pipeline_mode<synchronous>, transform_indices = @transform_6, window_bounds = array<i64: 128, 1024>}, {pipeline_mode = #tpu.pipeline_mode<synchronous>, transform_indices = @transform_7, window_bounds = array<i64: 64, 1024>}, {pipeline_mode = #tpu.pipeline_mode<synchronous>, transform_indices = @transform_8, window_bounds = array<i64: 1, 1024>}, {pipeline_mode = #tpu.pipeline_mode<synchronous>, transform_indices = @transform_9, window_bounds = array<i64: 1024, 256>}, {pipeline_mode = #tpu.pipeline_mode<synchronous>, transform_indices = @transform_10, window_bounds = array<i64: 1, 256>}, {transform_indices = @transform_11, window_bounds = array<i64: 1, 256>}]} {
    %c0 = arith.constant 0 : index
    %c0_0 = arith.constant 0 : index
    %0 = vector.load %arg1[%c0, %c0_0] : memref<1x128xf32, #tpu.memory_space<vmem>>, vector<1x128xf32>
    %c0_1 = arith.constant 0 : index
    %c0_2 = arith.constant 0 : index
    %1 = vector.load %arg5[%c0_1, %c0_2] : memref<128x1024xf32, #tpu.memory_space<vmem>>, vector<128x1024xf32>
    %cst = arith.constant dense<0.000000e+00> : vector<1x1024xf32>
    %2 = tpu.matmul %0, %1, %cst {dimension_numbers = #tpu.dot_dimension_numbers<[1], [0], [0], [1], [0, 0, 1, 1], [], []>} : vector<1x128xf32>, vector<128x1024xf32>, vector<1x1024xf32> -> vector<1x1024xf32>
    %c0_3 = arith.constant 0 : index
    %c0_4 = arith.constant 0 : index
    %3 = vector.load %arg2[%c0_3, %c0_4] : memref<1x128xf32, #tpu.memory_space<vmem>>, vector<1x128xf32>
    %c0_5 = arith.constant 0 : index
    %c0_6 = arith.constant 0 : index
    %4 = vector.load %arg6[%c0_5, %c0_6] : memref<128x1024xf32, #tpu.memory_space<vmem>>, vector<128x1024xf32>
    %cst_7 = arith.constant dense<0.000000e+00> : vector<1x1024xf32>
    %5 = tpu.matmul %3, %4, %cst_7 {dimension_numbers = #tpu.dot_dimension_numbers<[1], [0], [0], [1], [0, 0, 1, 1], [], []>} : vector<1x128xf32>, vector<128x1024xf32>, vector<1x1024xf32> -> vector<1x1024xf32>
    %6 = arith.addf %2, %5 : vector<1x1024xf32>
    %c0_8 = arith.constant 0 : index
    %c0_9 = arith.constant 0 : index
    %7 = vector.load %arg3[%c0_8, %c0_9] : memref<1x128xf32, #tpu.memory_space<vmem>>, vector<1x128xf32>
    %c0_10 = arith.constant 0 : index
    %c0_11 = arith.constant 0 : index
    %8 = vector.load %arg7[%c0_10, %c0_11] : memref<128x1024xf32, #tpu.memory_space<vmem>>, vector<128x1024xf32>
    %cst_12 = arith.constant dense<0.000000e+00> : vector<1x1024xf32>
    %9 = tpu.matmul %7, %8, %cst_12 {dimension_numbers = #tpu.dot_dimension_numbers<[1], [0], [0], [1], [0, 0, 1, 1], [], []>} : vector<1x128xf32>, vector<128x1024xf32>, vector<1x1024xf32> -> vector<1x1024xf32>
    %10 = arith.addf %6, %9 : vector<1x1024xf32>
    %c0_13 = arith.constant 0 : index
    %c0_14 = arith.constant 0 : index
    %11 = vector.load %arg4[%c0_13, %c0_14] : memref<1x64xf32, #tpu.memory_space<vmem>>, vector<1x64xf32>
    %c0_15 = arith.constant 0 : index
    %c0_16 = arith.constant 0 : index
    %12 = vector.load %arg8[%c0_15, %c0_16] : memref<64x1024xf32, #tpu.memory_space<vmem>>, vector<64x1024xf32>
    %cst_17 = arith.constant dense<0.000000e+00> : vector<1x1024xf32>
    %13 = tpu.matmul %11, %12, %cst_17 {dimension_numbers = #tpu.dot_dimension_numbers<[1], [0], [0], [1], [0, 0, 1, 1], [], []>} : vector<1x64xf32>, vector<64x1024xf32>, vector<1x1024xf32> -> vector<1x1024xf32>
    %14 = arith.addf %10, %13 : vector<1x1024xf32>
    %c0_18 = arith.constant 0 : index
    %c0_19 = arith.constant 0 : index
    %15 = vector.load %arg9[%c0_18, %c0_19] : memref<1x1024xf32, #tpu.memory_space<vmem>>, vector<1x1024xf32>
    %16 = arith.addf %14, %15 : vector<1x1024xf32>
    %cst_20 = arith.constant 0.000000e+00 : f32
    %17 = vector.broadcast %cst_20 : f32 to vector<1x1024xf32>
    %18 = arith.maximumf %16, %17 : vector<1x1024xf32>
    %c0_21 = arith.constant 0 : index
    %c0_22 = arith.constant 0 : index
    %19 = vector.load %arg10[%c0_21, %c0_22] : memref<1024x256xf32, #tpu.memory_space<vmem>>, vector<1024x256xf32>
    %cst_23 = arith.constant dense<0.000000e+00> : vector<1x256xf32>
    %20 = tpu.matmul %18, %19, %cst_23 {dimension_numbers = #tpu.dot_dimension_numbers<[1], [0], [0], [1], [0, 0, 1, 1], [], []>} : vector<1x1024xf32>, vector<1024x256xf32>, vector<1x256xf32> -> vector<1x256xf32>
    %c0_24 = arith.constant 0 : index
    %c0_25 = arith.constant 0 : index
    %21 = vector.load %arg11[%c0_24, %c0_25] : memref<1x256xf32, #tpu.memory_space<vmem>>, vector<1x256xf32>
    %22 = arith.addf %20, %21 : vector<1x256xf32>
    %c0_26 = arith.constant 0 : index
    %c0_27 = arith.constant 0 : index
    %23 = vector.load %arg12[%c0_26, %c0_27] : memref<1x256xf32, #tpu.memory_space<vmem>>, vector<1x256xf32>
    tpu.vector_store %arg12[%c0_26, %c0_27], %22 {strides = array<i32>} : memref<1x256xf32, #tpu.memory_space<vmem>>, vector<1x256xf32>,
    return
  }
  func.func @transform_0(%arg0: i32) -> (i32, i32) {
    %c0_i32 = arith.constant 0 : i32
    %c0_i32_0 = arith.constant 0 : i32
    return %arg0, %c0_i32 : i32, i32
  }
  func.func @transform_1(%arg0: i32) -> (i32, i32) {
    %c0_i32 = arith.constant 0 : i32
    %c0_i32_0 = arith.constant 0 : i32
    return %arg0, %c0_i32 : i32, i32
  }
  func.func @transform_2(%arg0: i32) -> (i32, i32) {
    %c0_i32 = arith.constant 0 : i32
    %c0_i32_0 = arith.constant 0 : i32
    return %arg0, %c0_i32 : i32, i32
  }
  func.func @transform_3(%arg0: i32) -> (i32, i32) {
    %c0_i32 = arith.constant 0 : i32
    %c0_i32_0 = arith.constant 0 : i32
    return %arg0, %c0_i32 : i32, i32
  }
  func.func @transform_4(%arg0: i32) -> (i32, i32) {
    %c0_i32 = arith.constant 0 : i32
    %c0_i32_0 = arith.constant 0 : i32
    %c0_i32_1 = arith.constant 0 : i32
    return %c0_i32, %c0_i32_0 : i32, i32
  }
  func.func @transform_5(%arg0: i32) -> (i32, i32) {
    %c0_i32 = arith.constant 0 : i32
    %c0_i32_0 = arith.constant 0 : i32
    %c0_i32_1 = arith.constant 0 : i32
    return %c0_i32, %c0_i32_0 : i32, i32
  }
  func.func @transform_6(%arg0: i32) -> (i32, i32) {
    %c0_i32 = arith.constant 0 : i32
    %c0_i32_0 = arith.constant 0 : i32
    %c0_i32_1 = arith.constant 0 : i32
    return %c0_i32, %c0_i32_0 : i32, i32
  }
  func.func @transform_7(%arg0: i32) -> (i32, i32) {
    %c0_i32 = arith.constant 0 : i32
    %c0_i32_0 = arith.constant 0 : i32
    %c0_i32_1 = arith.constant 0 : i32
    return %c0_i32, %c0_i32_0 : i32, i32
  }
  func.func @transform_8(%arg0: i32) -> (i32, i32) {
    %c0_i32 = arith.constant 0 : i32
    %c0_i32_0 = arith.constant 0 : i32
    %c0_i32_1 = arith.constant 0 : i32
    return %c0_i32, %c0_i32_0 : i32, i32
  }
  func.func @transform_9(%arg0: i32) -> (i32, i32) {
    %c0_i32 = arith.constant 0 : i32
    %c0_i32_0 = arith.constant 0 : i32
    %c0_i32_1 = arith.constant 0 : i32
    return %c0_i32, %c0_i32_0 : i32, i32
  }
  func.func @transform_10(%arg0: i32) -> (i32, i32) {
    %c0_i32 = arith.constant 0 : i32
    %c0_i32_0 = arith.constant 0 : i32
    %c0_i32_1 = arith.constant 0 : i32
    return %c0_i32, %c0_i32_0 : i32, i32
  }
  func.func @transform_11(%arg0: i32) -> (i32, i32) {
    %c0_i32 = arith.constant 0 : i32
    %c0_i32_0 = arith.constant 0 : i32
    return %arg0, %c0_i32 : i32, i32
  }
}

</mosaic_0001>

<bundles_post_ra>
// kernel: tile.13
= control target key start
LH: loop header
LB: loop body
LE: loop exit
PB: predicated region body
PF: predicated region fallthrough
CT: control target
= control target key end

     0   :  { %s40_s0 = inlined_call_operand.vmem [shape: f32[32], index: 0, kind: input, shape index: {}]   ;;  %s41_s1 = inlined_call_operand.vmem [shape: f32[32,32], index: 1, kind: output, shape index: {}]  }
   0x1   :  { %v4_v0 = vld [vmem:[%s40_s0] ss:$0 sm:$0xff] }
   0x2   :  { %5 = vst [vmem:[%s41_s1] sm:$0xff] %v4_v0  ;;  %12 = vst [vmem:[%s41_s1 + $0x8] sm:$0xff] %v4_v0 }
   0x3   :  { %13 = vst [vmem:[%s41_s1 + $0x10] sm:$0xff] %v4_v0  ;;  %14 = vst [vmem:[%s41_s1 + $0x18] sm:$0xff] %v4_v0 }

// kernel: tile.14
= control target key start
LH: loop header
LB: loop body
LE: loop exit
PB: predicated region body
PF: predicated region fallthrough
CT: control target
= control target key end

     0   :  { %s93_s8 = smov 96   ;;  %vm3_vm0 = vcmask 261120   ;;  %s95_s15 = smov 64   ;;  %vm10_vm1 = vcmask 1048320   ;;  %vm17_vm2 = vcmask 785920   ;;  %vm24_vm3 = vcmask 523520   ;;  %s142_s0 = inlined_call_operand.vmem [shape: f32[32,32], index: 0, kind: input, shape index: {}]   ;;  %s143_s1 = inlined_call_operand.vmem [shape: f32[1,1024], index: 1, kind: output, shape index: {}]  }
   0x1   :  { %v80_v0 = vld [vmem:[%s142_s0 + $0x3] ss:$4 sm:$0xff]   ;;  %v82_v1 = vld [vmem:[%s142_s0 + $0x1] ss:$4 sm:$0xff]   ;;  %v2_v2 = vld [vmem:[%s142_s0] ss:$4 sm:$0xff]  }
   0x2   :  { %8 = vrot.lane.b32.xlu0 %v80_v0, %s93_s8  ;;  %v81_v3 = vld [vmem:[%s142_s0 + $0x2] ss:$4 sm:$0xff]   ;;  %s94_s0 = smov 32   ;;  %4 = vst.msk [vmem:[#allocation0] ss:$8 sm:$0xf] %vm3_vm0, %v2_v2  }
   0x3   :  { %22 = vrot.lane.b32.xlu1 %v82_v1, %s94_s0  ;;  %5 = vst.msk [vmem:[#allocation0] ss:$8 sm:$0xf0] %vm3_vm0, %v2_v2  }
   0x6   :  { %15 = vrot.lane.b32.xlu0 %v81_v3, %s95_s15 }
  0x74   :  { %v9_v4 = vpop.permute.xlu0 %8  }
  0x75   :  { %11 = vst.msk [vmem:[#allocation0] ss:$8 sm:$0xf] %vm10_vm1, %v9_v4   ;;  %12 = vst.msk [vmem:[#allocation0] ss:$8 sm:$0xf0] %vm10_vm1, %v9_v4   ;;  %v23_v5 = vpop.permute.xlu1 %22  }
  0x78   :  { %v16_v6 = vpop.permute.xlu0 %15  }
  0x79   :  { %18 = vst.msk [vmem:[#allocation0] ss:$8 sm:$0xf] %vm17_vm2, %v16_v6   ;;  %19 = vst.msk [vmem:[#allocation0] ss:$8 sm:$0xf0] %vm17_vm2, %v16_v6  }
  0x7a   :  { %25 = vst.msk [vmem:[#allocation0] ss:$8 sm:$0xf] %vm24_vm3, %v23_v5   ;;  %26 = vst.msk [vmem:[#allocation0] ss:$8 sm:$0xf0] %vm24_vm3, %v23_v5  }
  0x81   :  { %v30_v7 = vld [vmem:[#allocation0] sm:$0x1]  ;;  %v34_v8 = vld [vmem:[#allocation0 + $0x8] sm:$0x1]  ;;  %v39_v9 = vld [vmem:[#allocation0 + $0x10] sm:$0x1] }
  0x82   :  { %32 = vst [vmem:[%s143_s1] sm:$0x1] %v30_v7  ;;  %83 = vst [vmem:[%s143_s1 + $0x1] sm:$0x1] %v34_v8  ;;  %v45_v10 = vld [vmem:[#allocation0 + $0x18] sm:$0x1] }
  0x83   :  { %84 = vst [vmem:[%s143_s1 + $0x2] sm:$0x1] %v39_v9  ;;  %v51_v11 = vld [vmem:[#allocation0 + $0x20] sm:$0x1]  ;;  %v57_v12 = vld [vmem:[#allocation0 + $0x28] sm:$0x1] }
  0x84   :  { %85 = vst [vmem:[%s143_s1 + $0x3] sm:$0x1] %v45_v10  ;;  %86 = vst [vmem:[%s143_s1 + $0x4] sm:$0x1] %v51_v11  ;;  %v63_v13 = vld [vmem:[#allocation0 + $0x30] sm:$0x1] }
  0x85   :  { %87 = vst [vmem:[%s143_s1 + $0x5] sm:$0x1] %v57_v12  ;;  %v69_v14 = vld [vmem:[#allocation0 + $0x38] sm:$0x1]  ;;  %88 = vst [vmem:[%s143_s1 + $0x6] sm:$0x1] %v63_v13 }
  0x86   :  { %89 = vst [vmem:[%s143_s1 + $0x7] sm:$0x1] %v69_v14 }

// kernel: tile.18
= control target key start
LH: loop header
LB: loop body
LE: loop exit
PB: predicated region body
PF: predicated region fallthrough
CT: control target
= control target key end

     0   :  { %s40_s0 = inlined_call_operand.vmem [shape: f32[8], index: 0, kind: input, shape index: {}]   ;;  %s41_s1 = inlined_call_operand.vmem [shape: f32[32,8], index: 1, kind: output, shape index: {}]  }
   0x1   :  { %v4_v0 = vld [vmem:[%s40_s0] ss:$0 sm:$0xff] }
   0x2   :  { %5 = vst [vmem:[%s41_s1] sm:$0xff] %v4_v0  ;;  %12 = vst [vmem:[%s41_s1 + $0x8] sm:$0xff] %v4_v0 }
   0x3   :  { %13 = vst [vmem:[%s41_s1 + $0x10] sm:$0xff] %v4_v0  ;;  %14 = vst [vmem:[%s41_s1 + $0x18] sm:$0xff] %v4_v0 }

// kernel: tile.19
= control target key start
LH: loop header
LB: loop body
LE: loop exit
PB: predicated region body
PF: predicated region fallthrough
CT: control target
= control target key end

     0   :  { %s7_s6 = smov 3  ;;  %s21_s9 = smov 3  ;;  %vm4_vm0 = vcmask 64512   ;;  %vm11_vm1 = vcmask 1048512   ;;  %vm18_vm2 = vcmask 982912   ;;  %vm25_vm3 = vcmask 917312   ;;  %s232_s0 = inlined_call_operand.vmem [shape: f32[32,8], index: 0, kind: input, shape index: {}]   ;;  %s233_s1 = inlined_call_operand.vmem [shape: f32[1,256], index: 1, kind: output, shape index: {}]  }
   0x1   :  { %v122_v0 = vld [vmem:[%s232_s0 + $0xf] ss:$16 sm:%s7_s6]   ;;  %s153_s10 = smov 120   ;;  %v124_v1 = vld [vmem:[%s232_s0 + $0xd] ss:$16 sm:%s21_s9]   ;;  %s14_s13 = smov 3 }
   0x2   :  { %9 = vrot.lane.b32.xlu0 %v122_v0, %s153_s10  ;;  %s154_s14 = smov 104   ;;  %v123_v2 = vld [vmem:[%s232_s0 + $0xe] ss:$16 sm:%s14_s13]   ;;  %s28_s17 = smov 3  ;;  %vm32_vm4 = vcmask 851712   ;;  %vm39_vm5 = vcmask 786112  }
   0x3   :  { %23 = vrot.lane.b32.xlu1 %v124_v1, %s154_s14  ;;  %v125_v3 = vld [vmem:[%s232_s0 + $0xc] ss:$16 sm:%s28_s17]   ;;  %s35_s20 = smov 3  ;;  %s42_s21 = smov 3  ;;  %vm46_vm6 = vcmask 720512   ;;  %vm53_vm7 = vcmask 654912  }
   0x4   :  { %s155_s22 = smov 112   ;;  %s156_s23 = smov 96   ;;  %v126_v4 = vld [vmem:[%s232_s0 + $0xb] ss:$16 sm:%s35_s20]   ;;  %v127_v5 = vld [vmem:[%s232_s0 + $0xa] ss:$16 sm:%s42_s21]  }
   0x5   :  { %s49_s28 = smov 3  ;;  %s56_s29 = smov 3  ;;  %vm60_vm8 = vcmask 589312   ;;  %vm67_vm9 = vcmask 523712   ;;  %vm74_vm10 = vcmask 458112   ;;  %vm81_vm11 = vcmask 392512  }
   0x6   :  { %16 = vrot.lane.b32.xlu0 %v123_v2, %s155_s22  ;;  %s157_s30 = smov 88   ;;  %s158_s2 = smov 80   ;;  %v128_v6 = vld [vmem:[%s232_s0 + $0x9] ss:$16 sm:%s49_s28]   ;;  %vm88_vm12 = vcmask 326912   ;;  %vm95_vm13 = vcmask 261312  }
   0x7   :  { %30 = vrot.lane.b32.xlu1 %v125_v3, %s156_s23  ;;  %v129_v7 = vld [vmem:[%s232_s0 + $0x8] ss:$16 sm:%s56_s29]   ;;  %s63_s7 = smov 3  ;;  %s70_s8 = smov 3  ;;  %vm102_vm14 = vcmask 195712   ;;  %vm109_vm15 = vcmask 130112  }
   0x8   :  { %s159_s9 = smov 72   ;;  %s160_s10 = smov 64   ;;  %v130_v8 = vld [vmem:[%s232_s0 + $0x7] ss:$16 sm:%s63_s7]   ;;  %v131_v9 = vld [vmem:[%s232_s0 + $0x6] ss:$16 sm:%s70_s8]  }
   0x9   :  { %s2_s13 = smov 3  ;;  %s77_s16 = smov 3 }
   0xa   :  { %37 = vrot.lane.b32.xlu0 %v126_v4, %s157_s30  ;;  %v3_v10 = vld [vmem:[%s232_s0] ss:$16 sm:%s2_s13]   ;;  %s84_s19 = smov 3  ;;  %s161_s20 = smov 56  }
   0xb   :  { %44 = vrot.lane.b32.xlu1 %v127_v5, %s158_s2  ;;  %5 = vst.msk [vmem:[#allocation0] ss:$8 sm:$0x3] %vm4_vm0, %v3_v10   ;;  %s162_s21 = smov 48   ;;  %v132_v11 = vld [vmem:[%s232_s0 + $0x5] ss:$16 sm:%s77_s16]  }
   0xc   :  { %v133_v12 = vld [vmem:[%s232_s0 + $0x4] ss:$16 sm:%s84_s19]   ;;  %s91_s26 = smov 3  ;;  %s98_s27 = smov 3 }
   0xd   :  { %s163_s28 = smov 40   ;;  %s164_s29 = smov 32   ;;  %v134_v13 = vld [vmem:[%s232_s0 + $0x3] ss:$16 sm:%s91_s26]   ;;  %v135_v14 = vld [vmem:[%s232_s0 + $0x2] ss:$16 sm:%s98_s27]  }
   0xe   :  { %51 = vrot.lane.b32.xlu0 %v128_v6, %s159_s9  ;;  %s105_s5 = smov 3  ;;  %s165_s6 = smov 24  }
   0xf   :  { %58 = vrot.lane.b32.xlu1 %v129_v7, %s160_s10  ;;  %s166_s7 = smov 16   ;;  %v136_v15 = vld [vmem:[%s232_s0 + $0x1] ss:$16 sm:%s105_s5]   ;;  %s167_s0 = smov 8  }
  0x12   :  { %65 = vrot.lane.b32.xlu0 %v130_v8, %s161_s20 }
  0x13   :  { %72 = vrot.lane.b32.xlu1 %v131_v9, %s162_s21 }
  0x16   :  { %79 = vrot.lane.b32.xlu0 %v132_v11, %s163_s28 }
  0x17   :  { %86 = vrot.lane.b32.xlu1 %v133_v12, %s164_s29 }
  0x1a   :  { %93 = vrot.lane.b32.xlu0 %v134_v13, %s165_s6 }
  0x1b   :  { %100 = vrot.lane.b32.xlu1 %v135_v14, %s166_s7 }
  0x1e   :  { %107 = vrot.lane.b32.xlu0 %v136_v15, %s167_s0 }
  0x74   :  { %v10_v16 = vpop.permute.xlu0 %9  }
  0x75   :  { %12 = vst.msk [vmem:[#allocation0] ss:$8 sm:$0x3] %vm11_vm1, %v10_v16   ;;  %v24_v17 = vpop.permute.xlu1 %23  }
  0x78   :  { %v17_v18 = vpop.permute.xlu0 %16  }
  0x79   :  { %19 = vst.msk [vmem:[#allocation0] ss:$8 sm:$0x3] %vm18_vm2, %v17_v18   ;;  %v31_v19 = vpop.permute.xlu1 %30  }
  0x7a   :  { %26 = vst.msk [vmem:[#allocation0] ss:$8 sm:$0x3] %vm25_vm3, %v24_v17  }
  0x7b   :  { %33 = vst.msk [vmem:[#allocation0] ss:$8 sm:$0x3] %vm32_vm4, %v31_v19  }
  0x7c   :  { %v38_v20 = vpop.permute.xlu0 %37  }
  0x7d   :  { %40 = vst.msk [vmem:[#allocation0] ss:$8 sm:$0x3] %vm39_vm5, %v38_v20   ;;  %v45_v21 = vpop.permute.xlu1 %44  }
  0x7e   :  { %47 = vst.msk [vmem:[#allocation0] ss:$8 sm:$0x3] %vm46_vm6, %v45_v21  }
  0x80   :  { %v52_v22 = vpop.permute.xlu0 %51  }
  0x81   :  { %54 = vst.msk [vmem:[#allocation0] ss:$8 sm:$0x3] %vm53_vm7, %v52_v22   ;;  %v59_v23 = vpop.permute.xlu1 %58  }
  0x82   :  { %61 = vst.msk [vmem:[#allocation0] ss:$8 sm:$0x3] %vm60_vm8, %v59_v23  }
  0x84   :  { %v66_v24 = vpop.permute.xlu0 %65  }
  0x85   :  { %68 = vst.msk [vmem:[#allocation0] ss:$8 sm:$0x3] %vm67_vm9, %v66_v24   ;;  %v73_v25 = vpop.permute.xlu1 %72  }
  0x86   :  { %75 = vst.msk [vmem:[#allocation0] ss:$8 sm:$0x3] %vm74_vm10, %v73_v25  }
  0x88   :  { %v80_v26 = vpop.permute.xlu0 %79  }
  0x89   :  { %82 = vst.msk [vmem:[#allocation0] ss:$8 sm:$0x3] %vm81_vm11, %v80_v26   ;;  %v87_v27 = vpop.permute.xlu1 %86  }
  0x8a   :  { %89 = vst.msk [vmem:[#allocation0] ss:$8 sm:$0x3] %vm88_vm12, %v87_v27  }
  0x8c   :  { %v94_v28 = vpop.permute.xlu0 %93  }
  0x8d   :  { %96 = vst.msk [vmem:[#allocation0] ss:$8 sm:$0x3] %vm95_vm13, %v94_v28   ;;  %v101_v29 = vpop.permute.xlu1 %100  }
  0x8e   :  { %103 = vst.msk [vmem:[#allocation0] ss:$8 sm:$0x3] %vm102_vm14, %v101_v29  }
  0x90   :  { %v108_v30 = vpop.permute.xlu0 %107  }
  0x91   :  { %110 = vst.msk [vmem:[#allocation0] ss:$8 sm:$0x3] %vm109_vm15, %v108_v30  }
  0x98   :  { %v114_v31 = vld [vmem:[#allocation0] sm:$0x1]  ;;  %v118_v32 = vld [vmem:[#allocation0 + $0x8] sm:$0x1] }
  0x99   :  { %116 = vst [vmem:[%s233_s1] sm:$0x1] %v114_v31  ;;  %137 = vst [vmem:[%s233_s1 + $0x1] sm:$0x1] %v118_v32 }

// kernel: edge_model_forward.1
= control target key start
LH: loop header
LB: loop body
LE: loop exit
PB: predicated region body
PF: predicated region fallthrough
CT: control target
= control target key end

     0   :  { %v3025_v3 = vmov 0.0   ;;  %vm1350_vm0 = vcmask 523264   ;;  %s5291_s5 = inlined_call_operand.vmem [shape: f32[128,1024], index: 5, kind: input, shape index: {}]   ;;  %s5292_s1 = inlined_call_operand.vmem [shape: f32[1,128], index: 1, kind: input, shape index: {}]   ;;  %s5293_s4 = inlined_call_operand.vmem [shape: f32[128,1024], index: 4, kind: input, shape index: {}]   ;;  %s5294_s0 = inlined_call_operand.vmem [shape: f32[1,128], index: 0, kind: input, shape index: {}]   ;;  %s5295_s6 = inlined_call_operand.vmem [shape: f32[128,1024], index: 6, kind: input, shape index: {}]   ;;  %s5296_s2 = inlined_call_operand.vmem [shape: f32[1,128], index: 2, kind: input, shape index: {}]   ;;  %s5297_s7 = inlined_call_operand.vmem [shape: f32[64,1024], index: 7, kind: input, shape index: {}]   ;;  %s5298_s3 = inlined_call_operand.vmem [shape: f32[1,64], index: 3, kind: input, shape index: {}]   ;;  %s5299_s9 = inlined_call_operand.vmem [shape: f32[1024,256], index: 9, kind: input, shape index: {}]   ;;  %s5300_s8 = inlined_call_operand.vmem [shape: f32[1,1024], index: 8, kind: input, shape index: {}]   ;;  %s5301_s10 = inlined_call_operand.vmem [shape: f32[1,256], index: 10, kind: input, shape index: {}]   ;;  %s5302_s11 = inlined_call_operand.vmem [shape: f32[1,256], index: 11, kind: output, shape index: {}]  }
   0x1   :  { %v169_v0 = vld [vmem:[%s5291_s5 + $0x8] sm:$0xff]  ;;  %v171_v2 = vld [vmem:[%s5291_s5 + $0x18] sm:$0xff]  ;;  %360 = vmatprep.mubr.f32.mxu0 %v3025_v3  ;;  %431 = vmatprep.mubr.f32.mxu1 %v3025_v3  ;;  %v168_v6 = vld [vmem:[%s5291_s5] sm:$0xff] }
   0x2   :  { %v177_v1 = vld [vmem:[%s5291_s5 + $0x48] sm:$0xff]  ;;  %v179_v5 = vld [vmem:[%s5291_s5 + $0x58] sm:$0xff]  ;;  %v176_v7 = vld [vmem:[%s5291_s5 + $0x40] sm:$0xff] }
   0x3   :  { %v2287_v4 = vpack.c.bf16 %v177_v1, %v169_v0  ;;  %v2319_v8 = vpack.c.bf16 %v179_v5, %v171_v2  ;;  %v2289_v9 = vpack.c.bf16 %v176_v7, %v168_v6  ;;  %v170_v10 = vld [vmem:[%s5291_s5 + $0x10] sm:$0xff]  ;;  %v185_v12 = vld [vmem:[%s5291_s5 + $0x88] sm:$0xff]  ;;  %v187_v15 = vld [vmem:[%s5291_s5 + $0x98] sm:$0xff] }
   0x4   :  { %v178_v11 = vld [vmem:[%s5291_s5 + $0x50] sm:$0xff]  ;;  %v193_v14 = vld [vmem:[%s5291_s5 + $0xc8] sm:$0xff]  ;;  %v195_v16 = vld [vmem:[%s5291_s5 + $0xd8] sm:$0xff] }
   0x5   :  { %2288 = vmatprep.subr.bf16.mxu0 %v2287_v4  ;;  %v2321_v13 = vpack.c.bf16 %v178_v11, %v170_v10  ;;  %2320 = vmatprep.subr.bf16.mxu1 %v2319_v8  ;;  %v2291_v17 = vpack.c.bf16 %v193_v14, %v185_v12  ;;  %v2323_v18 = vpack.c.bf16 %v195_v16, %v187_v15  ;;  %v184_v19 = vld [vmem:[%s5291_s5 + $0x80] sm:$0xff]  ;;  %v186_v21 = vld [vmem:[%s5291_s5 + $0x90] sm:$0xff]  ;;  %v201_v24 = vld [vmem:[%s5291_s5 + $0x108] sm:$0xff] }
   0x6   :  { %2290 = vmatpush1.bf16.msra.mxu0 %v2289_v9  ;;  %v192_v20 = vld [vmem:[%s5291_s5 + $0xc0] sm:$0xff]  ;;  %v194_v23 = vld [vmem:[%s5291_s5 + $0xd0] sm:$0xff]  ;;  %v209_v25 = vld [vmem:[%s5291_s5 + $0x148] sm:$0xff] }
   0x7   :  { %2322 = vmatpush1.bf16.msra.mxu1 %v2321_v13  ;;  %v2293_v22 = vpack.c.bf16 %v192_v20, %v184_v19  ;;  %2292 = vmatprep.subr.bf16.mxu0 %v2291_v17  ;;  %v2325_v26 = vpack.c.bf16 %v194_v23, %v186_v21  ;;  %v2295_v27 = vpack.c.bf16 %v209_v25, %v201_v24  ;;  %v203_v28 = vld [vmem:[%s5291_s5 + $0x118] sm:$0xff]  ;;  %v200_v30 = vld [vmem:[%s5291_s5 + $0x100] sm:$0xff]  ;;  %v202_v33 = vld [vmem:[%s5291_s5 + $0x110] sm:$0xff] }
   0x8   :  { %2324 = vmatprep.subr.bf16.mxu1 %v2323_v18  ;;  %v211_v29 = vld [vmem:[%s5291_s5 + $0x158] sm:$0xff]  ;;  %v208_v32 = vld [vmem:[%s5291_s5 + $0x140] sm:$0xff]  ;;  %v210_v34 = vld [vmem:[%s5291_s5 + $0x150] sm:$0xff] }
   0x9   :  { %v2327_v31 = vpack.c.bf16 %v211_v29, %v203_v28  ;;  %v2297_v35 = vpack.c.bf16 %v208_v32, %v200_v30  ;;  %v217_v36 = vld [vmem:[%s5291_s5 + $0x188] sm:$0xff]  ;;  %v219_v38 = vld [vmem:[%s5291_s5 + $0x198] sm:$0xff]  ;;  %v2329_v39 = vpack.c.bf16 %v210_v34, %v202_v33  ;;  %v216_v42 = vld [vmem:[%s5291_s5 + $0x180] sm:$0xff] }
   0xa   :  { %2294 = vmatpush1.bf16.msra.mxu0 %v2293_v22  ;;  %v225_v37 = vld [vmem:[%s5291_s5 + $0x1c8] sm:$0xff]  ;;  %v227_v41 = vld [vmem:[%s5291_s5 + $0x1d8] sm:$0xff]  ;;  %v224_v43 = vld [vmem:[%s5291_s5 + $0x1c0] sm:$0xff] }
   0xb   :  { %2326 = vmatpush1.bf16.msra.mxu1 %v2325_v26  ;;  %2296 = vmatprep.subr.bf16.mxu0 %v2295_v27  ;;  %v2299_v40 = vpack.c.bf16 %v225_v37, %v217_v36  ;;  %v2331_v44 = vpack.c.bf16 %v227_v41, %v219_v38  ;;  %v218_v45 = vld [vmem:[%s5291_s5 + $0x190] sm:$0xff]  ;;  %v233_v47 = vld [vmem:[%s5291_s5 + $0x208] sm:$0xff]  ;;  %v235_v49 = vld [vmem:[%s5291_s5 + $0x218] sm:$0xff]  ;;  %v2301_v51 = vpack.c.bf16 %v224_v43, %v216_v42 }
   0xc   :  { %2328 = vmatprep.subr.bf16.mxu1 %v2327_v31  ;;  %v226_v46 = vld [vmem:[%s5291_s5 + $0x1d0] sm:$0xff]  ;;  %v241_v48 = vld [vmem:[%s5291_s5 + $0x248] sm:$0xff]  ;;  %v243_v50 = vld [vmem:[%s5291_s5 + $0x258] sm:$0xff] }
   0xd   :  { %v2333_v52 = vpack.c.bf16 %v226_v46, %v218_v45  ;;  %v2303_v53 = vpack.c.bf16 %v241_v48, %v233_v47  ;;  %v232_v54 = vld [vmem:[%s5291_s5 + $0x200] sm:$0xff]  ;;  %v234_v56 = vld [vmem:[%s5291_s5 + $0x210] sm:$0xff]  ;;  %v2335_v57 = vpack.c.bf16 %v243_v50, %v235_v49  ;;  %v249_v59 = vld [vmem:[%s5291_s5 + $0x288] sm:$0xff] }
   0xe   :  { %2298 = vmatpush1.bf16.msra.mxu0 %v2297_v35  ;;  %v240_v55 = vld [vmem:[%s5291_s5 + $0x240] sm:$0xff]  ;;  %v242_v58 = vld [vmem:[%s5291_s5 + $0x250] sm:$0xff]  ;;  %v257_v60 = vld [vmem:[%s5291_s5 + $0x2c8] sm:$0xff] }
   0xf   :  { %2330 = vmatpush1.bf16.msra.mxu1 %v2329_v39  ;;  %2300 = vmatprep.subr.bf16.mxu0 %v2299_v40  ;;  %v251_v61 = vld [vmem:[%s5291_s5 + $0x298] sm:$0xff]  ;;  %v2305_v63 = vpack.c.bf16 %v240_v55, %v232_v54  ;;  %v2337_v0 = vpack.c.bf16 %v242_v58, %v234_v56  ;;  %v2307_v1 = vpack.c.bf16 %v257_v60, %v249_v59  ;;  %v248_v2 = vld [vmem:[%s5291_s5 + $0x280] sm:$0xff]  ;;  %v250_v5 = vld [vmem:[%s5291_s5 + $0x290] sm:$0xff] }
  0x10   :  { %2332 = vmatprep.subr.bf16.mxu1 %v2331_v44  ;;  %v259_v62 = vld [vmem:[%s5291_s5 + $0x2d8] sm:$0xff]  ;;  %v256_v4 = vld [vmem:[%s5291_s5 + $0x2c0] sm:$0xff]  ;;  %v258_v7 = vld [vmem:[%s5291_s5 + $0x2d0] sm:$0xff] }
  0x11   :  { %v2339_v6 = vpack.c.bf16 %v259_v62, %v251_v61  ;;  %v265_v8 = vld [vmem:[%s5291_s5 + $0x308] sm:$0xff]  ;;  %v267_v10 = vld [vmem:[%s5291_s5 + $0x318] sm:$0xff]  ;;  %v2309_v12 = vpack.c.bf16 %v256_v4, %v248_v2  ;;  %v2341_v13 = vpack.c.bf16 %v258_v7, %v250_v5  ;;  %v264_v15 = vld [vmem:[%s5291_s5 + $0x300] sm:$0xff] }
  0x12   :  { %2302 = vmatpush1.bf16.msra.mxu0 %v2301_v51  ;;  %v273_v9 = vld [vmem:[%s5291_s5 + $0x348] sm:$0xff]  ;;  %v275_v11 = vld [vmem:[%s5291_s5 + $0x358] sm:$0xff]  ;;  %v272_v16 = vld [vmem:[%s5291_s5 + $0x340] sm:$0xff] }
  0x13   :  { %2334 = vmatpush1.bf16.msra.mxu1 %v2333_v52  ;;  %2304 = vmatprep.subr.bf16.mxu0 %v2303_v53  ;;  %v2311_v14 = vpack.c.bf16 %v273_v9, %v265_v8  ;;  %v266_v17 = vld [vmem:[%s5291_s5 + $0x310] sm:$0xff]  ;;  %v2343_v18 = vpack.c.bf16 %v275_v11, %v267_v10  ;;  %v281_v20 = vld [vmem:[%s5291_s5 + $0x388] sm:$0xff]  ;;  %v283_v22 = vld [vmem:[%s5291_s5 + $0x398] sm:$0xff]  ;;  %v2313_v24 = vpack.c.bf16 %v272_v16, %v264_v15 }
  0x14   :  { %2336 = vmatprep.subr.bf16.mxu1 %v2335_v57  ;;  %v274_v19 = vld [vmem:[%s5291_s5 + $0x350] sm:$0xff]  ;;  %v289_v21 = vld [vmem:[%s5291_s5 + $0x3c8] sm:$0xff]  ;;  %v291_v23 = vld [vmem:[%s5291_s5 + $0x3d8] sm:$0xff] }
  0x15   :  { %v2345_v25 = vpack.c.bf16 %v274_v19, %v266_v17  ;;  %v2315_v26 = vpack.c.bf16 %v289_v21, %v281_v20  ;;  %v280_v27 = vld [vmem:[%s5291_s5 + $0x380] sm:$0xff]  ;;  %v282_v29 = vld [vmem:[%s5291_s5 + $0x390] sm:$0xff]  ;;  %v2347_v30 = vpack.c.bf16 %v291_v23, %v283_v22  ;;  %v173_v32 = vld [vmem:[%s5291_s5 + $0x28] sm:$0xff] }
  0x16   :  { %2306 = vmatpush1.bf16.msra.mxu0 %v2305_v63  ;;  %v288_v28 = vld [vmem:[%s5291_s5 + $0x3c0] sm:$0xff]  ;;  %v290_v31 = vld [vmem:[%s5291_s5 + $0x3d0] sm:$0xff]  ;;  %v181_v33 = vld [vmem:[%s5291_s5 + $0x68] sm:$0xff] }
  0x17   :  { %2338 = vmatpush1.bf16.msra.mxu1 %v2337_v0  ;;  %2308 = vmatprep.subr.bf16.mxu0 %v2307_v1  ;;  %v175_v34 = vld [vmem:[%s5291_s5 + $0x38] sm:$0xff]  ;;  %v2317_v36 = vpack.c.bf16 %v288_v28, %v280_v27  ;;  %v2349_v37 = vpack.c.bf16 %v290_v31, %v282_v29  ;;  %v2351_v38 = vpack.c.bf16 %v181_v33, %v173_v32  ;;  %v172_v39 = vld [vmem:[%s5291_s5 + $0x20] sm:$0xff]  ;;  %v174_v41 = vld [vmem:[%s5291_s5 + $0x30] sm:$0xff] }
  0x18   :  { %2340 = vmatprep.subr.bf16.mxu1 %v2339_v6  ;;  %v183_v35 = vld [vmem:[%s5291_s5 + $0x78] sm:$0xff]  ;;  %v180_v40 = vld [vmem:[%s5291_s5 + $0x60] sm:$0xff]  ;;  %v182_v43 = vld [vmem:[%s5291_s5 + $0x70] sm:$0xff] }
  0x19   :  { %v2383_v42 = vpack.c.bf16 %v183_v35, %v175_v34  ;;  %v189_v44 = vld [vmem:[%s5291_s5 + $0xa8] sm:$0xff]  ;;  %v191_v46 = vld [vmem:[%s5291_s5 + $0xb8] sm:$0xff]  ;;  %v3320_v48 = vld [vmem:[%s5292_s1] sm:$0x1]  ;;  %v2353_v49 = vpack.c.bf16 %v180_v40, %v172_v39  ;;  %v2385_v50 = vpack.c.bf16 %v182_v43, %v174_v41 }
  0x1a   :  { %2310 = vmatpush1.bf16.msra.mxu0 %v2309_v12  ;;  %v197_v45 = vld [vmem:[%s5291_s5 + $0xe8] sm:$0xff]  ;;  %v199_v47 = vld [vmem:[%s5291_s5 + $0xf8] sm:$0xff]  ;;  %v188_v52 = vld [vmem:[%s5291_s5 + $0xa0] sm:$0xff] }
  0x1b   :  { %2342 = vmatpush1.bf16.msra.mxu1 %v2341_v13  ;;  %2312 = vmatprep.subr.bf16.mxu0 %v2311_v14  ;;  %v2355_v51 = vpack.c.bf16 %v197_v45, %v189_v44  ;;  %v196_v53 = vld [vmem:[%s5291_s5 + $0xe0] sm:$0xff]  ;;  %v190_v54 = vld [vmem:[%s5291_s5 + $0xb0] sm:$0xff]  ;;  %v2387_v55 = vpack.c.bf16 %v199_v47, %v191_v46  ;;  %v205_v57 = vld [vmem:[%s5291_s5 + $0x128] sm:$0xff] }
  0x1c   :  { %2344 = vmatprep.subr.bf16.mxu1 %v2343_v18  ;;  %v198_v56 = vld [vmem:[%s5291_s5 + $0xf0] sm:$0xff]  ;;  %v213_v58 = vld [vmem:[%s5291_s5 + $0x168] sm:$0xff]  ;;  %v207_v59 = vld [vmem:[%s5291_s5 + $0x138] sm:$0xff]  ;;  %v2357_v61 = vpack.c.bf16 %v196_v53, %v188_v52 }
  0x1d   :  { %v215_v60 = vld [vmem:[%s5291_s5 + $0x178] sm:$0xff]  ;;  %v2389_v62 = vpack.c.bf16 %v198_v56, %v190_v54  ;;  %v2359_v63 = vpack.c.bf16 %v213_v58, %v205_v57  ;;  %v204_v0 = vld [vmem:[%s5291_s5 + $0x120] sm:$0xff]  ;;  %v206_v2 = vld [vmem:[%s5291_s5 + $0x130] sm:$0xff] }
  0x1e   :  { %2314 = vmatpush1.bf16.msra.mxu0 %v2313_v24  ;;  %v212_v1 = vld [vmem:[%s5291_s5 + $0x160] sm:$0xff]  ;;  %v2391_v4 = vpack.c.bf16 %v215_v60, %v207_v59  ;;  %v214_v5 = vld [vmem:[%s5291_s5 + $0x170] sm:$0xff]  ;;  %v221_v6 = vld [vmem:[%s5291_s5 + $0x1a8] sm:$0xff] }
  0x1f   :  { %2346 = vmatpush1.bf16.msra.mxu1 %v2345_v25  ;;  %2316 = vmatprep.subr.bf16.mxu0 %v2315_v26  ;;  %v229_v7 = vld [vmem:[%s5291_s5 + $0x1e8] sm:$0xff]  ;;  %v223_v8 = vld [vmem:[%s5291_s5 + $0x1b8] sm:$0xff]  ;;  %v2361_v10 = vpack.c.bf16 %v212_v1, %v204_v0  ;;  %v2393_v11 = vpack.c.bf16 %v214_v5, %v206_v2  ;;  %v220_v13 = vld [vmem:[%s5291_s5 + $0x1a0] sm:$0xff] }
  0x20   :  { %2348 = vmatprep.subr.bf16.mxu1 %v2347_v30  ;;  %v231_v9 = vld [vmem:[%s5291_s5 + $0x1f8] sm:$0xff]  ;;  %v2363_v12 = vpack.c.bf16 %v229_v7, %v221_v6  ;;  %v228_v14 = vld [vmem:[%s5291_s5 + $0x1e0] sm:$0xff]  ;;  %v222_v15 = vld [vmem:[%s5291_s5 + $0x1b0] sm:$0xff] }
  0x21   :  { %v2395_v16 = vpack.c.bf16 %v231_v9, %v223_v8  ;;  %v230_v17 = vld [vmem:[%s5291_s5 + $0x1f0] sm:$0xff]  ;;  %v237_v18 = vld [vmem:[%s5291_s5 + $0x228] sm:$0xff]  ;;  %v239_v20 = vld [vmem:[%s5291_s5 + $0x238] sm:$0xff]  ;;  %v2365_v22 = vpack.c.bf16 %v228_v14, %v220_v13 }
  0x22   :  { %2318 = vmatpush1.bf16.msra.mxu0 %v2317_v36  ;;  %v245_v19 = vld [vmem:[%s5291_s5 + $0x268] sm:$0xff]  ;;  %v247_v21 = vld [vmem:[%s5291_s5 + $0x278] sm:$0xff]  ;;  %v2397_v23 = vpack.c.bf16 %v230_v17, %v222_v15  ;;  %v236_v25 = vld [vmem:[%s5291_s5 + $0x220] sm:$0xff] }
  0x23   :  { %2350 = vmatpush1.bf16.msra.mxu1 %v2349_v37  ;;  %2352 = vmatprep.subr.bf16.mxu0 %v2351_v38  ;;  %v2367_v24 = vpack.c.bf16 %v245_v19, %v237_v18  ;;  %v244_v26 = vld [vmem:[%s5291_s5 + $0x260] sm:$0xff]  ;;  %v238_v27 = vld [vmem:[%s5291_s5 + $0x230] sm:$0xff]  ;;  %v2399_v28 = vpack.c.bf16 %v247_v21, %v239_v20  ;;  %v253_v30 = vld [vmem:[%s5291_s5 + $0x2a8] sm:$0xff] }
  0x24   :  { %2384 = vmatprep.subr.bf16.mxu1 %v2383_v42  ;;  %v246_v29 = vld [vmem:[%s5291_s5 + $0x270] sm:$0xff]  ;;  %v261_v31 = vld [vmem:[%s5291_s5 + $0x2e8] sm:$0xff]  ;;  %v255_v32 = vld [vmem:[%s5291_s5 + $0x2b8] sm:$0xff]  ;;  %v2369_v34 = vpack.c.bf16 %v244_v26, %v236_v25 }
  0x25   :  { %361 = vmatmul.mubr.f32.vlgmr.msra.gmra.mrb[0].mxu0 %v3320_v48  ;;  %v263_v33 = vld [vmem:[%s5291_s5 + $0x2f8] sm:$0xff]  ;;  %v2401_v35 = vpack.c.bf16 %v246_v29, %v238_v27  ;;  %v2371_v36 = vpack.c.bf16 %v261_v31, %v253_v30  ;;  %v252_v37 = vld [vmem:[%s5291_s5 + $0x2a0] sm:$0xff]  ;;  %v254_v39 = vld [vmem:[%s5291_s5 + $0x2b0] sm:$0xff] }
  0x26   :  { %432 = vmatmul.mubr.f32.vlgmr.msra.gmra.mrb[0].mxu1 %v3320_v48  ;;  %2354 = vmatpush1.bf16.msra.mxu0 %v2353_v49  ;;  %v260_v38 = vld [vmem:[%s5291_s5 + $0x2e0] sm:$0xff]  ;;  %v2403_v40 = vpack.c.bf16 %v263_v33, %v255_v32  ;;  %v262_v41 = vld [vmem:[%s5291_s5 + $0x2f0] sm:$0xff]  ;;  %v269_v42 = vld [vmem:[%s5291_s5 + $0x328] sm:$0xff] }
  0x27   :  { %2386 = vmatpush1.bf16.msra.mxu1 %v2385_v50  ;;  %2356 = vmatprep.subr.bf16.mxu0 %v2355_v51  ;;  %v277_v43 = vld [vmem:[%s5291_s5 + $0x368] sm:$0xff]  ;;  %v271_v44 = vld [vmem:[%s5291_s5 + $0x338] sm:$0xff]  ;;  %v2373_v46 = vpack.c.bf16 %v260_v38, %v252_v37  ;;  %v2405_v47 = vpack.c.bf16 %v262_v41, %v254_v39  ;;  %v268_v50 = vld [vmem:[%s5291_s5 + $0x320] sm:$0xff] }
  0x28   :  { %2388 = vmatprep.subr.bf16.mxu1 %v2387_v55  ;;  %502 = vmatprep.mubr.f32.mxu0 %v3025_v3  ;;  %v279_v45 = vld [vmem:[%s5291_s5 + $0x378] sm:$0xff]  ;;  %v2375_v49 = vpack.c.bf16 %v277_v43, %v269_v42  ;;  %v276_v51 = vld [vmem:[%s5291_s5 + $0x360] sm:$0xff]  ;;  %v270_v52 = vld [vmem:[%s5291_s5 + $0x330] sm:$0xff] }
  0x29   :  { %573 = vmatprep.mubr.f32.mxu1 %v3025_v3  ;;  %v2407_v53 = vpack.c.bf16 %v279_v45, %v271_v44  ;;  %v278_v54 = vld [vmem:[%s5291_s5 + $0x370] sm:$0xff]  ;;  %v285_v55 = vld [vmem:[%s5291_s5 + $0x3a8] sm:$0xff]  ;;  %v287_v57 = vld [vmem:[%s5291_s5 + $0x3b8] sm:$0xff]  ;;  %v2377_v59 = vpack.c.bf16 %v276_v51, %v268_v50 }
  0x2a   :  { %2358 = vmatpush1.bf16.msra.mxu0 %v2357_v61  ;;  %v293_v56 = vld [vmem:[%s5291_s5 + $0x3e8] sm:$0xff]  ;;  %v295_v58 = vld [vmem:[%s5291_s5 + $0x3f8] sm:$0xff]  ;;  %v2409_v60 = vpack.c.bf16 %v278_v54, %v270_v52  ;;  %v286_v0 = vld [vmem:[%s5291_s5 + $0x3b0] sm:$0xff] }
  0x2b   :  { %2390 = vmatpush1.bf16.msra.mxu1 %v2389_v62  ;;  %2360 = vmatprep.subr.bf16.mxu0 %v2359_v63  ;;  %v2379_v61 = vpack.c.bf16 %v293_v56, %v285_v55  ;;  %v284_v62 = vld [vmem:[%s5291_s5 + $0x3a0] sm:$0xff]  ;;  %v2411_v1 = vpack.c.bf16 %v295_v58, %v287_v57  ;;  %v294_v2 = vld [vmem:[%s5291_s5 + $0x3f0] sm:$0xff]  ;;  %v48_v5 = vld [vmem:[%s5293_s4 + $0x48] sm:$0xff] }
  0x2c   :  { %2392 = vmatprep.subr.bf16.mxu1 %v2391_v4  ;;  %v292_v63 = vld [vmem:[%s5291_s5 + $0x3e0] sm:$0xff]  ;;  %v40_v4 = vld [vmem:[%s5293_s4 + $0x8] sm:$0xff]  ;;  %v42_v6 = vld [vmem:[%s5293_s4 + $0x18] sm:$0xff]  ;;  %v2413_v9 = vpack.c.bf16 %v294_v2, %v286_v0 }
  0x2d   :  { %v50_v7 = vld [vmem:[%s5293_s4 + $0x58] sm:$0xff]  ;;  %v2381_v8 = vpack.c.bf16 %v292_v63, %v284_v62  ;;  %v41_v13 = vld [vmem:[%s5293_s4 + $0x10] sm:$0xff]  ;;  %v64_v17 = vld [vmem:[%s5293_s4 + $0xc8] sm:$0xff] }
  0x2e   :  { %2362 = vmatpush1.bf16.msra.mxu0 %v2361_v10  ;;  %v2415_v10 = vpack.c.bf16 %v48_v5, %v40_v4  ;;  %v2447_v14 = vpack.c.bf16 %v50_v7, %v42_v6  ;;  %v49_v15 = vld [vmem:[%s5293_s4 + $0x50] sm:$0xff]  ;;  %v58_v18 = vld [vmem:[%s5293_s4 + $0x98] sm:$0xff]  ;;  %v80_v29 = vld [vmem:[%s5293_s4 + $0x148] sm:$0xff] }
  0x2f   :  { %2394 = vmatpush1.bf16.msra.mxu1 %v2393_v11  ;;  %2364 = vmatprep.subr.bf16.mxu0 %v2363_v12  ;;  %v39_v11 = vld [vmem:[%s5293_s4] sm:$0xff]  ;;  %v66_v19 = vld [vmem:[%s5293_s4 + $0xd8] sm:$0xff]  ;;  %v2449_v21 = vpack.c.bf16 %v49_v15, %v41_v13  ;;  %v57_v25 = vld [vmem:[%s5293_s4 + $0x90] sm:$0xff] }
  0x30   :  { %2396 = vmatprep.subr.bf16.mxu1 %v2395_v16  ;;  %v47_v12 = vld [vmem:[%s5293_s4 + $0x40] sm:$0xff]  ;;  %v56_v16 = vld [vmem:[%s5293_s4 + $0x88] sm:$0xff]  ;;  %v2451_v26 = vpack.c.bf16 %v66_v19, %v58_v18  ;;  %v65_v27 = vld [vmem:[%s5293_s4 + $0xd0] sm:$0xff] }
  0x31   :  { %v2417_v20 = vpack.c.bf16 %v47_v12, %v39_v11  ;;  %v74_v30 = vld [vmem:[%s5293_s4 + $0x118] sm:$0xff]  ;;  %v2453_v33 = vpack.c.bf16 %v65_v27, %v57_v25  ;;  %v73_v37 = vld [vmem:[%s5293_s4 + $0x110] sm:$0xff]  ;;  %v88_v39 = vld [vmem:[%s5293_s4 + $0x188] sm:$0xff] }
  0x32   :  { %2366 = vmatpush1.bf16.msra.mxu0 %v2365_v22  ;;  %v2419_v22 = vpack.c.bf16 %v64_v17, %v56_v16  ;;  %v82_v31 = vld [vmem:[%s5293_s4 + $0x158] sm:$0xff]  ;;  %v81_v38 = vld [vmem:[%s5293_s4 + $0x150] sm:$0xff]  ;;  %v104_v52 = vld [vmem:[%s5293_s4 + $0x208] sm:$0xff] }
  0x33   :  { %2398 = vmatpush1.bf16.msra.mxu1 %v2397_v23  ;;  %2368 = vmatprep.subr.bf16.mxu0 %v2367_v24  ;;  %v55_v23 = vld [vmem:[%s5293_s4 + $0x80] sm:$0xff]  ;;  %v90_v41 = vld [vmem:[%s5293_s4 + $0x198] sm:$0xff]  ;;  %v2457_v44 = vpack.c.bf16 %v81_v38, %v73_v37  ;;  %v97_v51 = vld [vmem:[%s5293_s4 + $0x1d0] sm:$0xff] }
  0x34   :  { %2400 = vmatprep.subr.bf16.mxu1 %v2399_v28  ;;  %v63_v24 = vld [vmem:[%s5293_s4 + $0xc0] sm:$0xff]  ;;  %v72_v28 = vld [vmem:[%s5293_s4 + $0x108] sm:$0xff]  ;;  %v98_v42 = vld [vmem:[%s5293_s4 + $0x1d8] sm:$0xff] }
  0x35   :  { %v2421_v32 = vpack.c.bf16 %v63_v24, %v55_v23  ;;  %v2459_v50 = vpack.c.bf16 %v98_v42, %v90_v41  ;;  %v106_v54 = vld [vmem:[%s5293_s4 + $0x218] sm:$0xff]  ;;  %v113_v63 = vld [vmem:[%s5293_s4 + $0x250] sm:$0xff]  ;;  %v120_v0 = vld [vmem:[%s5293_s4 + $0x288] sm:$0xff] }
  0x36   :  { %2370 = vmatpush1.bf16.msra.mxu0 %v2369_v34  ;;  %v2423_v34 = vpack.c.bf16 %v80_v29, %v72_v28  ;;  %v114_v55 = vld [vmem:[%s5293_s4 + $0x258] sm:$0xff]  ;;  %v129_v12 = vld [vmem:[%s5293_s4 + $0x2d0] sm:$0xff]  ;;  %v136_v13 = vld [vmem:[%s5293_s4 + $0x308] sm:$0xff] }
  0x37   :  { %2402 = vmatpush1.bf16.msra.mxu1 %v2401_v35  ;;  %2372 = vmatprep.subr.bf16.mxu0 %v2371_v36  ;;  %v71_v35 = vld [vmem:[%s5293_s4 + $0x100] sm:$0xff]  ;;  %v2463_v62 = vpack.c.bf16 %v114_v55, %v106_v54  ;;  %v122_v2 = vld [vmem:[%s5293_s4 + $0x298] sm:$0xff]  ;;  %v145_v24 = vld [vmem:[%s5293_s4 + $0x350] sm:$0xff] }
  0x38   :  { %2404 = vmatprep.subr.bf16.mxu1 %v2403_v40  ;;  %v79_v36 = vld [vmem:[%s5293_s4 + $0x140] sm:$0xff]  ;;  %v96_v40 = vld [vmem:[%s5293_s4 + $0x1c8] sm:$0xff]  ;;  %v130_v4 = vld [vmem:[%s5293_s4 + $0x2d8] sm:$0xff] }
  0x39   :  { %v2425_v43 = vpack.c.bf16 %v79_v36, %v71_v35  ;;  %v2427_v45 = vpack.c.bf16 %v96_v40, %v88_v39  ;;  %v2467_v11 = vpack.c.bf16 %v130_v4, %v122_v2  ;;  %v138_v15 = vld [vmem:[%s5293_s4 + $0x318] sm:$0xff]  ;;  %v152_v25 = vld [vmem:[%s5293_s4 + $0x388] sm:$0xff]  ;;  %v161_v36 = vld [vmem:[%s5293_s4 + $0x3d0] sm:$0xff] }
  0x3a   :  { %2374 = vmatpush1.bf16.msra.mxu0 %v2373_v46  ;;  %v87_v46 = vld [vmem:[%s5293_s4 + $0x180] sm:$0xff]  ;;  %v146_v16 = vld [vmem:[%s5293_s4 + $0x358] sm:$0xff]  ;;  %v44_v37 = vld [vmem:[%s5293_s4 + $0x28] sm:$0xff] }
  0x3b   :  { %2406 = vmatpush1.bf16.msra.mxu1 %v2405_v47  ;;  %2376 = vmatprep.subr.bf16.mxu0 %v2375_v49  ;;  %v95_v47 = vld [vmem:[%s5293_s4 + $0x1c0] sm:$0xff]  ;;  %v89_v49 = vld [vmem:[%s5293_s4 + $0x190] sm:$0xff]  ;;  %v2471_v23 = vpack.c.bf16 %v146_v16, %v138_v15  ;;  %v154_v27 = vld [vmem:[%s5293_s4 + $0x398] sm:$0xff] }
  0x3c   :  { %2408 = vmatprep.subr.bf16.mxu1 %v2407_v53  ;;  %v112_v53 = vld [vmem:[%s5293_s4 + $0x248] sm:$0xff]  ;;  %v2429_v56 = vpack.c.bf16 %v95_v47, %v87_v46  ;;  %v2461_v57 = vpack.c.bf16 %v97_v51, %v89_v49  ;;  %v162_v28 = vld [vmem:[%s5293_s4 + $0x3d8] sm:$0xff]  ;;  %v53_v47 = vld [vmem:[%s5293_s4 + $0x70] sm:$0xff] }
  0x3d   :  { %v2431_v58 = vpack.c.bf16 %v112_v53, %v104_v52  ;;  %v2475_v35 = vpack.c.bf16 %v162_v28, %v154_v27  ;;  %v46_v38 = vld [vmem:[%s5293_s4 + $0x38] sm:$0xff]  ;;  %v60_v49 = vld [vmem:[%s5293_s4 + $0xa8] sm:$0xff]  ;;  %v3717_v53 = vld [vmem:[%s5294_s0] sm:$0x1] }
  0x3e   :  { %2378 = vmatpush1.bf16.msra.mxu0 %v2377_v59  ;;  %v103_v59 = vld [vmem:[%s5293_s4 + $0x200] sm:$0xff]  ;;  %v54_v39 = vld [vmem:[%s5293_s4 + $0x78] sm:$0xff] }
  0x3f   :  { %2410 = vmatpush1.bf16.msra.mxu1 %v2409_v60  ;;  %2380 = vmatprep.subr.bf16.mxu0 %v2379_v61  ;;  %v111_v60 = vld [vmem:[%s5293_s4 + $0x240] sm:$0xff]  ;;  %v105_v61 = vld [vmem:[%s5293_s4 + $0x210] sm:$0xff]  ;;  %v2511_v46 = vpack.c.bf16 %v54_v39, %v46_v38  ;;  %v62_v51 = vld [vmem:[%s5293_s4 + $0xb8] sm:$0xff] }
  0x40   :  { %2412 = vmatprep.subr.bf16.mxu1 %v2411_v1  ;;  %v128_v1 = vld [vmem:[%s5293_s4 + $0x2c8] sm:$0xff]  ;;  %v2433_v5 = vpack.c.bf16 %v111_v60, %v103_v59  ;;  %v2465_v6 = vpack.c.bf16 %v113_v63, %v105_v61  ;;  %v70_v52 = vld [vmem:[%s5293_s4 + $0xf8] sm:$0xff]  ;;  %v61_v59 = vld [vmem:[%s5293_s4 + $0xb0] sm:$0xff] }
  0x41   :  { %v2435_v7 = vpack.c.bf16 %v128_v1, %v120_v0  ;;  %v2515_v60 = vpack.c.bf16 %v70_v52, %v62_v51  ;;  %v69_v61 = vld [vmem:[%s5293_s4 + $0xf0] sm:$0xff]  ;;  %v84_v63 = vld [vmem:[%s5293_s4 + $0x168] sm:$0xff]  ;;  %v78_v0 = vld [vmem:[%s5293_s4 + $0x138] sm:$0xff] }
  0x42   :  { %2382 = vmatpush1.bf16.msra.mxu0 %v2381_v8  ;;  %v119_v8 = vld [vmem:[%s5293_s4 + $0x280] sm:$0xff]  ;;  %v86_v1 = vld [vmem:[%s5293_s4 + $0x178] sm:$0xff]  ;;  %v2517_v4 = vpack.c.bf16 %v69_v61, %v61_v59  ;;  %v149_v59 = vld [vmem:[%s5293_s4 + $0x370] sm:$0xff] }
  0x43   :  { %2414 = vmatpush1.bf16.msra.mxu1 %v2413_v9  ;;  %2416 = vmatprep.subr.bf16.mxu0 %v2415_v10  ;;  %v127_v9 = vld [vmem:[%s5293_s4 + $0x2c0] sm:$0xff]  ;;  %v121_v10 = vld [vmem:[%s5293_s4 + $0x290] sm:$0xff]  ;;  %v164_v61 = vld [vmem:[%s5293_s4 + $0x3e8] sm:$0xff] }
  0x44   :  { %2448 = vmatprep.subr.bf16.mxu1 %v2447_v14  ;;  %v144_v14 = vld [vmem:[%s5293_s4 + $0x348] sm:$0xff]  ;;  %v2437_v17 = vpack.c.bf16 %v127_v9, %v119_v8  ;;  %v2469_v18 = vpack.c.bf16 %v129_v12, %v121_v10  ;;  %v77_v8 = vld [vmem:[%s5293_s4 + $0x130] sm:$0xff]  ;;  %v2519_v9 = vpack.c.bf16 %v86_v1, %v78_v0 }
  0x45   :  { %503 = vmatmul.mubr.f32.vlgmr.msra.gmra.mrb[2].mxu0 %v3320_v48  ;;  %v2439_v19 = vpack.c.bf16 %v144_v14, %v136_v13  ;;  %v85_v10 = vld [vmem:[%s5293_s4 + $0x170] sm:$0xff]  ;;  %v100_v12 = vld [vmem:[%s5293_s4 + $0x1e8] sm:$0xff]  ;;  %v94_v13 = vld [vmem:[%s5293_s4 + $0x1b8] sm:$0xff] }
  0x46   :  { %574 = vmatmul.mubr.f32.vlgmr.msra.gmra.mrb[2].mxu1 %v3320_v48  ;;  %2418 = vmatpush1.bf16.msra.mxu0 %v2417_v20  ;;  %v2455_v48 = vpack.c.bf16 %v82_v31, %v74_v30  ;;  %v135_v20 = vld [vmem:[%s5293_s4 + $0x300] sm:$0xff]  ;;  %v102_v14 = vld [vmem:[%s5293_s4 + $0x1f8] sm:$0xff]  ;;  %v2521_v16 = vpack.c.bf16 %v85_v10, %v77_v8  ;;  %v165_v8 = vld [vmem:[%s5293_s4 + $0x3f0] sm:$0xff] }
  0x47   :  { %2450 = vmatpush1.bf16.msra.mxu1 %v2449_v21  ;;  %2420 = vmatprep.subr.bf16.mxu0 %v2419_v22  ;;  %v143_v21 = vld [vmem:[%s5293_s4 + $0x340] sm:$0xff]  ;;  %v137_v22 = vld [vmem:[%s5293_s4 + $0x310] sm:$0xff]  ;;  %v874_v10 = vld [vmem:[%s5295_s6 + $0x48] sm:$0xff] }
  0x48   :  { %2452 = vmatprep.subr.bf16.mxu1 %v2451_v26  ;;  %644 = vmatprep.mubr.f32.mxu0 %v3025_v3  ;;  %v160_v26 = vld [vmem:[%s5293_s4 + $0x3c8] sm:$0xff]  ;;  %v2441_v29 = vpack.c.bf16 %v143_v21, %v135_v20  ;;  %v2473_v30 = vpack.c.bf16 %v145_v24, %v137_v22  ;;  %v93_v20 = vld [vmem:[%s5293_s4 + $0x1b0] sm:$0xff]  ;;  %v2523_v21 = vpack.c.bf16 %v102_v14, %v94_v13 }
  0x49   :  { %715 = vmatprep.mubr.f32.mxu1 %v3025_v3  ;;  %v2443_v31 = vpack.c.bf16 %v160_v26, %v152_v25  ;;  %v101_v22 = vld [vmem:[%s5293_s4 + $0x1f0] sm:$0xff]  ;;  %v116_v24 = vld [vmem:[%s5293_s4 + $0x268] sm:$0xff]  ;;  %v110_v25 = vld [vmem:[%s5293_s4 + $0x238] sm:$0xff] }
  0x4a   :  { %2422 = vmatpush1.bf16.msra.mxu0 %v2421_v32  ;;  %v151_v32 = vld [vmem:[%s5293_s4 + $0x380] sm:$0xff]  ;;  %v118_v26 = vld [vmem:[%s5293_s4 + $0x278] sm:$0xff]  ;;  %v2525_v28 = vpack.c.bf16 %v101_v22, %v93_v20  ;;  %v875_v20 = vld [vmem:[%s5295_s6 + $0x50] sm:$0xff] }
  0x4b   :  { %2454 = vmatpush1.bf16.msra.mxu1 %v2453_v33  ;;  %2424 = vmatprep.subr.bf16.mxu0 %v2423_v34  ;;  %v159_v33 = vld [vmem:[%s5293_s4 + $0x3c0] sm:$0xff]  ;;  %v153_v34 = vld [vmem:[%s5293_s4 + $0x390] sm:$0xff]  ;;  %v890_v22 = vld [vmem:[%s5295_s6 + $0xc8] sm:$0xff] }
  0x4c   :  { %2456 = vmatprep.subr.bf16.mxu1 %v2455_v48  ;;  %v52_v48 = vld [vmem:[%s5293_s4 + $0x68] sm:$0xff]  ;;  %v2445_v40 = vpack.c.bf16 %v159_v33, %v151_v32  ;;  %v2477_v41 = vpack.c.bf16 %v161_v36, %v153_v34  ;;  %v109_v32 = vld [vmem:[%s5293_s4 + $0x230] sm:$0xff]  ;;  %v2527_v33 = vpack.c.bf16 %v118_v26, %v110_v25 }
  0x4d   :  { %v2479_v42 = vpack.c.bf16 %v52_v48, %v44_v37  ;;  %v117_v34 = vld [vmem:[%s5293_s4 + $0x270] sm:$0xff]  ;;  %v132_v36 = vld [vmem:[%s5293_s4 + $0x2e8] sm:$0xff]  ;;  %v126_v37 = vld [vmem:[%s5293_s4 + $0x2b8] sm:$0xff] }
  0x4e   :  { %2426 = vmatpush1.bf16.msra.mxu0 %v2425_v43  ;;  %v43_v43 = vld [vmem:[%s5293_s4 + $0x20] sm:$0xff]  ;;  %v134_v48 = vld [vmem:[%s5293_s4 + $0x2f8] sm:$0xff]  ;;  %v2529_v39 = vpack.c.bf16 %v117_v34, %v109_v32  ;;  %v891_v32 = vld [vmem:[%s5295_s6 + $0xd0] sm:$0xff] }
  0x4f   :  { %2458 = vmatpush1.bf16.msra.mxu1 %v2457_v44  ;;  %2428 = vmatprep.subr.bf16.mxu0 %v2427_v45  ;;  %v51_v44 = vld [vmem:[%s5293_s4 + $0x60] sm:$0xff]  ;;  %v45_v45 = vld [vmem:[%s5293_s4 + $0x30] sm:$0xff]  ;;  %v906_v34 = vld [vmem:[%s5295_s6 + $0x148] sm:$0xff] }
  0x50   :  { %2460 = vmatprep.subr.bf16.mxu1 %v2459_v50  ;;  %v68_v50 = vld [vmem:[%s5293_s4 + $0xe8] sm:$0xff]  ;;  %v2481_v54 = vpack.c.bf16 %v51_v44, %v43_v43  ;;  %v2513_v55 = vpack.c.bf16 %v53_v47, %v45_v45  ;;  %v125_v43 = vld [vmem:[%s5293_s4 + $0x2b0] sm:$0xff]  ;;  %v2531_v44 = vpack.c.bf16 %v134_v48, %v126_v37 }
  0x51   :  { %v133_v45 = vld [vmem:[%s5293_s4 + $0x2f0] sm:$0xff]  ;;  %v148_v47 = vld [vmem:[%s5293_s4 + $0x368] sm:$0xff] }
  0x52   :  { %2430 = vmatpush1.bf16.msra.mxu0 %v2429_v56  ;;  %v2483_v56 = vpack.c.bf16 %v68_v50, %v60_v49  ;;  %v142_v49 = vld [vmem:[%s5293_s4 + $0x338] sm:$0xff]  ;;  %v2533_v52 = vpack.c.bf16 %v133_v45, %v125_v43  ;;  %v914_v43 = vld [vmem:[%s5295_s6 + $0x188] sm:$0xff] }
  0x53   :  { %2462 = vmatpush1.bf16.msra.mxu1 %v2461_v57  ;;  %2432 = vmatprep.subr.bf16.mxu0 %v2431_v58  ;;  %v59_v57 = vld [vmem:[%s5293_s4 + $0xa0] sm:$0xff]  ;;  %v150_v50 = vld [vmem:[%s5293_s4 + $0x378] sm:$0xff] }
  0x54   :  { %2464 = vmatprep.subr.bf16.mxu1 %v2463_v62  ;;  %v67_v58 = vld [vmem:[%s5293_s4 + $0xe0] sm:$0xff]  ;;  %v76_v62 = vld [vmem:[%s5293_s4 + $0x128] sm:$0xff]  ;;  %v916_v45 = vld [vmem:[%s5295_s6 + $0x198] sm:$0xff] }
  0x55   :  { %v2485_v2 = vpack.c.bf16 %v67_v58, %v59_v57  ;;  %v141_v57 = vld [vmem:[%s5293_s4 + $0x330] sm:$0xff]  ;;  %v2535_v58 = vpack.c.bf16 %v150_v50, %v142_v49 }
  0x56   :  { %2434 = vmatpush1.bf16.msra.mxu0 %v2433_v5  ;;  %v2487_v5 = vpack.c.bf16 %v84_v63, %v76_v62  ;;  %v158_v62 = vld [vmem:[%s5293_s4 + $0x3b8] sm:$0xff]  ;;  %v2537_v1 = vpack.c.bf16 %v149_v59, %v141_v57  ;;  %v930_v57 = vld [vmem:[%s5295_s6 + $0x208] sm:$0xff] }
  0x57   :  { %2466 = vmatpush1.bf16.msra.mxu1 %v2465_v6  ;;  %2436 = vmatprep.subr.bf16.mxu0 %v2435_v7  ;;  %v75_v6 = vld [vmem:[%s5293_s4 + $0x120] sm:$0xff]  ;;  %v166_v63 = vld [vmem:[%s5293_s4 + $0x3f8] sm:$0xff] }
  0x58   :  { %2468 = vmatprep.subr.bf16.mxu1 %v2467_v11  ;;  %v83_v7 = vld [vmem:[%s5293_s4 + $0x160] sm:$0xff]  ;;  %v92_v11 = vld [vmem:[%s5293_s4 + $0x1a8] sm:$0xff]  ;;  %v932_v59 = vld [vmem:[%s5295_s6 + $0x218] sm:$0xff] }
  0x59   :  { %v2489_v15 = vpack.c.bf16 %v83_v7, %v75_v6  ;;  %v157_v6 = vld [vmem:[%s5293_s4 + $0x3b0] sm:$0xff]  ;;  %v2539_v7 = vpack.c.bf16 %v166_v63, %v158_v62 }
  0x5a   :  { %2438 = vmatpush1.bf16.msra.mxu0 %v2437_v17  ;;  %v2491_v17 = vpack.c.bf16 %v100_v12, %v92_v11  ;;  %v868_v11 = vld [vmem:[%s5295_s6 + $0x18] sm:$0xff]  ;;  %v2541_v14 = vpack.c.bf16 %v165_v8, %v157_v6  ;;  %v946_v6 = vld [vmem:[%s5295_s6 + $0x288] sm:$0xff] }
  0x5b   :  { %2470 = vmatpush1.bf16.msra.mxu1 %v2469_v18  ;;  %2440 = vmatprep.subr.bf16.mxu0 %v2439_v19  ;;  %v91_v18 = vld [vmem:[%s5293_s4 + $0x1a0] sm:$0xff]  ;;  %v876_v12 = vld [vmem:[%s5295_s6 + $0x58] sm:$0xff] }
  0x5c   :  { %2472 = vmatprep.subr.bf16.mxu1 %v2471_v23  ;;  %v99_v19 = vld [vmem:[%s5293_s4 + $0x1e0] sm:$0xff]  ;;  %v108_v23 = vld [vmem:[%s5293_s4 + $0x228] sm:$0xff]  ;;  %v948_v8 = vld [vmem:[%s5295_s6 + $0x298] sm:$0xff] }
  0x5d   :  { %v2493_v27 = vpack.c.bf16 %v99_v19, %v91_v18  ;;  %v867_v18 = vld [vmem:[%s5295_s6 + $0x10] sm:$0xff]  ;;  %v2575_v19 = vpack.c.bf16 %v876_v12, %v868_v11 }
  0x5e   :  { %2442 = vmatpush1.bf16.msra.mxu0 %v2441_v29  ;;  %v2495_v29 = vpack.c.bf16 %v116_v24, %v108_v23  ;;  %v884_v23 = vld [vmem:[%s5295_s6 + $0x98] sm:$0xff]  ;;  %v2577_v26 = vpack.c.bf16 %v875_v20, %v867_v18  ;;  %v962_v18 = vld [vmem:[%s5295_s6 + $0x308] sm:$0xff] }
  0x5f   :  { %2474 = vmatpush1.bf16.msra.mxu1 %v2473_v30  ;;  %2444 = vmatprep.subr.bf16.mxu0 %v2443_v31  ;;  %v107_v30 = vld [vmem:[%s5293_s4 + $0x220] sm:$0xff]  ;;  %v892_v24 = vld [vmem:[%s5295_s6 + $0xd8] sm:$0xff] }
  0x60   :  { %2476 = vmatprep.subr.bf16.mxu1 %v2475_v35  ;;  %v115_v31 = vld [vmem:[%s5293_s4 + $0x260] sm:$0xff]  ;;  %v124_v35 = vld [vmem:[%s5293_s4 + $0x2a8] sm:$0xff]  ;;  %v964_v20 = vld [vmem:[%s5295_s6 + $0x318] sm:$0xff] }
  0x61   :  { %v2497_v38 = vpack.c.bf16 %v115_v31, %v107_v30  ;;  %v883_v30 = vld [vmem:[%s5295_s6 + $0x90] sm:$0xff]  ;;  %v2579_v31 = vpack.c.bf16 %v892_v24, %v884_v23 }
  0x62   :  { %2446 = vmatpush1.bf16.msra.mxu0 %v2445_v40  ;;  %v2499_v40 = vpack.c.bf16 %v132_v36, %v124_v35  ;;  %v900_v35 = vld [vmem:[%s5295_s6 + $0x118] sm:$0xff]  ;;  %v2581_v48 = vpack.c.bf16 %v891_v32, %v883_v30  ;;  %v978_v30 = vld [vmem:[%s5295_s6 + $0x388] sm:$0xff] }
  0x63   :  { %2478 = vmatpush1.bf16.msra.mxu1 %v2477_v41  ;;  %2480 = vmatprep.subr.bf16.mxu0 %v2479_v42  ;;  %v123_v41 = vld [vmem:[%s5293_s4 + $0x2a0] sm:$0xff]  ;;  %v908_v36 = vld [vmem:[%s5295_s6 + $0x158] sm:$0xff] }
  0x64   :  { %2512 = vmatprep.subr.bf16.mxu1 %v2511_v46  ;;  %v131_v42 = vld [vmem:[%s5293_s4 + $0x2e0] sm:$0xff]  ;;  %v140_v46 = vld [vmem:[%s5293_s4 + $0x328] sm:$0xff]  ;;  %v980_v32 = vld [vmem:[%s5295_s6 + $0x398] sm:$0xff] }
  0x65   :  { %645 = vmatmul.mubr.f32.vlgmr.msra.gmra.mrb[0].mxu0 %v3717_v53  ;;  %v2501_v51 = vpack.c.bf16 %v131_v42, %v123_v41  ;;  %v899_v41 = vld [vmem:[%s5295_s6 + $0x110] sm:$0xff] }
  0x66   :  { %716 = vmatmul.mubr.f32.vlgmr.msra.gmra.mrb[0].mxu1 %v3717_v53  ;;  %2482 = vmatpush1.bf16.msra.mxu0 %v2481_v54  ;;  %v2503_v54 = vpack.c.bf16 %v148_v47, %v140_v46  ;;  %v907_v42 = vld [vmem:[%s5295_s6 + $0x150] sm:$0xff]  ;;  %v924_v46 = vld [vmem:[%s5295_s6 + $0x1d8] sm:$0xff] }
  0x67   :  { %2514 = vmatpush1.bf16.msra.mxu1 %v2513_v55  ;;  %2484 = vmatprep.subr.bf16.mxu0 %v2483_v56  ;;  %v139_v55 = vld [vmem:[%s5293_s4 + $0x320] sm:$0xff]  ;;  %v2585_v49 = vpack.c.bf16 %v907_v42, %v899_v41  ;;  %v870_v41 = vld [vmem:[%s5295_s6 + $0x28] sm:$0xff]  ;;  %v872_v42 = vld [vmem:[%s5295_s6 + $0x38] sm:$0xff] }
  0x68   :  { %2516 = vmatprep.subr.bf16.mxu1 %v2515_v60  ;;  %786 = vmatprep.mubr.f32.mxu0 %v3025_v3  ;;  %v147_v56 = vld [vmem:[%s5293_s4 + $0x360] sm:$0xff]  ;;  %v156_v60 = vld [vmem:[%s5293_s4 + $0x3a8] sm:$0xff] }
  0x69   :  { %857 = vmatprep.mubr.f32.mxu1 %v3025_v3  ;;  %v2505_v0 = vpack.c.bf16 %v147_v56, %v139_v55  ;;  %v2587_v55 = vpack.c.bf16 %v924_v46, %v916_v45  ;;  %v923_v56 = vld [vmem:[%s5295_s6 + $0x1d0] sm:$0xff] }
  0x6a   :  { %2486 = vmatpush1.bf16.msra.mxu0 %v2485_v2  ;;  %v2507_v2 = vpack.c.bf16 %v164_v61, %v156_v60  ;;  %v940_v60 = vld [vmem:[%s5295_s6 + $0x258] sm:$0xff] }
  0x6b   :  { %2518 = vmatpush1.bf16.msra.mxu1 %v2517_v4  ;;  %2488 = vmatprep.subr.bf16.mxu0 %v2487_v5  ;;  %v155_v4 = vld [vmem:[%s5293_s4 + $0x3a0] sm:$0xff] }
  0x6c   :  { %2520 = vmatprep.subr.bf16.mxu1 %v2519_v9  ;;  %v163_v5 = vld [vmem:[%s5293_s4 + $0x3e0] sm:$0xff]  ;;  %v866_v9 = vld [vmem:[%s5295_s6 + $0x8] sm:$0xff] }
  0x6d   :  { %v2509_v13 = vpack.c.bf16 %v163_v5, %v155_v4  ;;  %v2591_v4 = vpack.c.bf16 %v940_v60, %v932_v59  ;;  %v939_v5 = vld [vmem:[%s5295_s6 + $0x250] sm:$0xff] }
  0x6e   :  { %2490 = vmatpush1.bf16.msra.mxu0 %v2489_v15  ;;  %v2543_v15 = vpack.c.bf16 %v874_v10, %v866_v9  ;;  %v956_v9 = vld [vmem:[%s5295_s6 + $0x2d8] sm:$0xff] }
  0x6f   :  { %2522 = vmatpush1.bf16.msra.mxu1 %v2521_v16  ;;  %2492 = vmatprep.subr.bf16.mxu0 %v2491_v17  ;;  %v865_v16 = vld [vmem:[%s5295_s6] sm:$0xff] }
  0x70   :  { %2524 = vmatprep.subr.bf16.mxu1 %v2523_v21  ;;  %v873_v17 = vld [vmem:[%s5295_s6 + $0x40] sm:$0xff]  ;;  %v882_v21 = vld [vmem:[%s5295_s6 + $0x88] sm:$0xff] }
  0x71   :  { %v2545_v25 = vpack.c.bf16 %v873_v17, %v865_v16  ;;  %v2595_v16 = vpack.c.bf16 %v956_v9, %v948_v8  ;;  %v955_v17 = vld [vmem:[%s5295_s6 + $0x2d0] sm:$0xff] }
  0x72   :  { %2494 = vmatpush1.bf16.msra.mxu0 %v2493_v27  ;;  %v2547_v27 = vpack.c.bf16 %v890_v22, %v882_v21  ;;  %v972_v21 = vld [vmem:[%s5295_s6 + $0x358] sm:$0xff] }
  0x73   :  { %2526 = vmatpush1.bf16.msra.mxu1 %v2525_v28  ;;  %2496 = vmatprep.subr.bf16.mxu0 %v2495_v29  ;;  %v881_v28 = vld [vmem:[%s5295_s6 + $0x80] sm:$0xff] }
  0x74   :  { %2528 = vmatprep.subr.bf16.mxu1 %v2527_v33  ;;  %v889_v29 = vld [vmem:[%s5295_s6 + $0xc0] sm:$0xff]  ;;  %v898_v33 = vld [vmem:[%s5295_s6 + $0x108] sm:$0xff] }
  0x75   :  { %v2549_v37 = vpack.c.bf16 %v889_v29, %v881_v28  ;;  %v2599_v28 = vpack.c.bf16 %v972_v21, %v964_v20  ;;  %v971_v29 = vld [vmem:[%s5295_s6 + $0x350] sm:$0xff] }
  0x76   :  { %2498 = vmatpush1.bf16.msra.mxu0 %v2497_v38  ;;  %v2551_v38 = vpack.c.bf16 %v906_v34, %v898_v33  ;;  %v988_v33 = vld [vmem:[%s5295_s6 + $0x3d8] sm:$0xff] }
  0x77   :  { %2530 = vmatpush1.bf16.msra.mxu1 %v2529_v39  ;;  %2500 = vmatprep.subr.bf16.mxu0 %v2499_v40  ;;  %v897_v39 = vld [vmem:[%s5295_s6 + $0x100] sm:$0xff] }
  0x78   :  { %2532 = vmatprep.subr.bf16.mxu1 %v2531_v44  ;;  %v905_v40 = vld [vmem:[%s5295_s6 + $0x140] sm:$0xff]  ;;  %v922_v44 = vld [vmem:[%s5295_s6 + $0x1c8] sm:$0xff] }
  0x79   :  { %v2553_v47 = vpack.c.bf16 %v905_v40, %v897_v39  ;;  %v2555_v50 = vpack.c.bf16 %v922_v44, %v914_v43  ;;  %v2603_v39 = vpack.c.bf16 %v988_v33, %v980_v32  ;;  %v987_v40 = vld [vmem:[%s5295_s6 + $0x3d0] sm:$0xff]  ;;  %v880_v43 = vld [vmem:[%s5295_s6 + $0x78] sm:$0xff] }
  0x7a   :  { %2502 = vmatpush1.bf16.msra.mxu0 %v2501_v51  ;;  %v913_v51 = vld [vmem:[%s5295_s6 + $0x180] sm:$0xff] }
  0x7b   :  { %2534 = vmatpush1.bf16.msra.mxu1 %v2533_v52  ;;  %2504 = vmatprep.subr.bf16.mxu0 %v2503_v54  ;;  %v921_v52 = vld [vmem:[%s5295_s6 + $0x1c0] sm:$0xff]  ;;  %v915_v54 = vld [vmem:[%s5295_s6 + $0x190] sm:$0xff] }
  0x7c   :  { %2536 = vmatprep.subr.bf16.mxu1 %v2535_v58  ;;  %v938_v58 = vld [vmem:[%s5295_s6 + $0x248] sm:$0xff]  ;;  %v2557_v61 = vpack.c.bf16 %v921_v52, %v913_v51  ;;  %v2589_v62 = vpack.c.bf16 %v923_v56, %v915_v54  ;;  %v2639_v51 = vpack.c.bf16 %v880_v43, %v872_v42  ;;  %v879_v52 = vld [vmem:[%s5295_s6 + $0x70] sm:$0xff]  ;;  %v888_v56 = vld [vmem:[%s5295_s6 + $0xb8] sm:$0xff] }
  0x7d   :  { %v2559_v63 = vpack.c.bf16 %v938_v58, %v930_v57  ;;  %v886_v54 = vld [vmem:[%s5295_s6 + $0xa8] sm:$0xff]  ;;  %v896_v57 = vld [vmem:[%s5295_s6 + $0xf8] sm:$0xff]  ;;  %v4114_v58 = vld [vmem:[%s5296_s2] sm:$0x1] }
  0x7e   :  { %2506 = vmatpush1.bf16.msra.mxu0 %v2505_v0  ;;  %v929_v0 = vld [vmem:[%s5295_s6 + $0x200] sm:$0xff] }
  0x7f   :  { %2538 = vmatpush1.bf16.msra.mxu1 %v2537_v1  ;;  %2508 = vmatprep.subr.bf16.mxu0 %v2507_v2  ;;  %v937_v1 = vld [vmem:[%s5295_s6 + $0x240] sm:$0xff]  ;;  %v931_v2 = vld [vmem:[%s5295_s6 + $0x210] sm:$0xff] }
  0x80   :  { %2540 = vmatprep.subr.bf16.mxu1 %v2539_v7  ;;  %v954_v7 = vld [vmem:[%s5295_s6 + $0x2c8] sm:$0xff]  ;;  %v2561_v10 = vpack.c.bf16 %v937_v1, %v929_v0  ;;  %v2593_v11 = vpack.c.bf16 %v939_v5, %v931_v2  ;;  %v887_v0 = vld [vmem:[%s5295_s6 + $0xb0] sm:$0xff]  ;;  %v2643_v1 = vpack.c.bf16 %v896_v57, %v888_v56 }
  0x81   :  { %v2563_v12 = vpack.c.bf16 %v954_v7, %v946_v6  ;;  %v895_v2 = vld [vmem:[%s5295_s6 + $0xf0] sm:$0xff]  ;;  %v910_v5 = vld [vmem:[%s5295_s6 + $0x168] sm:$0xff]  ;;  %v904_v6 = vld [vmem:[%s5295_s6 + $0x138] sm:$0xff] }
  0x82   :  { %2510 = vmatpush1.bf16.msra.mxu0 %v2509_v13  ;;  %v945_v13 = vld [vmem:[%s5295_s6 + $0x280] sm:$0xff]  ;;  %v912_v7 = vld [vmem:[%s5295_s6 + $0x178] sm:$0xff]  ;;  %v2645_v9 = vpack.c.bf16 %v895_v2, %v887_v0  ;;  %v975_v0 = vld [vmem:[%s5295_s6 + $0x370] sm:$0xff] }
  0x83   :  { %2542 = vmatpush1.bf16.msra.mxu1 %v2541_v14  ;;  %2544 = vmatprep.subr.bf16.mxu0 %v2543_v15  ;;  %v953_v14 = vld [vmem:[%s5295_s6 + $0x2c0] sm:$0xff]  ;;  %v947_v15 = vld [vmem:[%s5295_s6 + $0x290] sm:$0xff]  ;;  %v990_v2 = vld [vmem:[%s5295_s6 + $0x3e8] sm:$0xff] }
  0x84   :  { %2576 = vmatprep.subr.bf16.mxu1 %v2575_v19  ;;  %v970_v19 = vld [vmem:[%s5295_s6 + $0x348] sm:$0xff]  ;;  %v2565_v22 = vpack.c.bf16 %v953_v14, %v945_v13  ;;  %v2597_v23 = vpack.c.bf16 %v955_v17, %v947_v15  ;;  %v903_v13 = vld [vmem:[%s5295_s6 + $0x130] sm:$0xff]  ;;  %v2647_v14 = vpack.c.bf16 %v912_v7, %v904_v6 }
  0x85   :  { %787 = vmatmul.mubr.f32.vlgmr.msra.gmra.mrb[2].mxu0 %v3717_v53  ;;  %v2567_v24 = vpack.c.bf16 %v970_v19, %v962_v18  ;;  %v911_v15 = vld [vmem:[%s5295_s6 + $0x170] sm:$0xff]  ;;  %v926_v17 = vld [vmem:[%s5295_s6 + $0x1e8] sm:$0xff]  ;;  %v920_v18 = vld [vmem:[%s5295_s6 + $0x1b8] sm:$0xff] }
  0x86   :  { %858 = vmatmul.mubr.f32.vlgmr.msra.gmra.mrb[2].mxu1 %v3717_v53  ;;  %2546 = vmatpush1.bf16.msra.mxu0 %v2545_v25  ;;  %v2583_v53 = vpack.c.bf16 %v908_v36, %v900_v35  ;;  %v961_v25 = vld [vmem:[%s5295_s6 + $0x300] sm:$0xff]  ;;  %v928_v19 = vld [vmem:[%s5295_s6 + $0x1f8] sm:$0xff]  ;;  %v2649_v21 = vpack.c.bf16 %v911_v15, %v903_v13  ;;  %v991_v13 = vld [vmem:[%s5295_s6 + $0x3f0] sm:$0xff] }
  0x87   :  { %2578 = vmatpush1.bf16.msra.mxu1 %v2577_v26  ;;  %2548 = vmatprep.subr.bf16.mxu0 %v2547_v27  ;;  %v969_v26 = vld [vmem:[%s5295_s6 + $0x340] sm:$0xff]  ;;  %v963_v27 = vld [vmem:[%s5295_s6 + $0x310] sm:$0xff]  ;;  %v1295_v15 = vld [vmem:[%s5297_s7 + $0x48] sm:$0xff] }
  0x88   :  { %2580 = vmatprep.subr.bf16.mxu1 %v2579_v31  ;;  %1057 = vmatprep.mubr.f32.mxu0 %v3025_v3  ;;  %v986_v31 = vld [vmem:[%s5295_s6 + $0x3c8] sm:$0xff]  ;;  %v2569_v34 = vpack.c.bf16 %v969_v26, %v961_v25  ;;  %v2601_v35 = vpack.c.bf16 %v971_v29, %v963_v27  ;;  %v919_v25 = vld [vmem:[%s5295_s6 + $0x1b0] sm:$0xff]  ;;  %v2651_v26 = vpack.c.bf16 %v928_v19, %v920_v18 }
  0x89   :  { %1128 = vmatprep.mubr.f32.mxu1 %v3025_v3  ;;  %v2571_v36 = vpack.c.bf16 %v986_v31, %v978_v30  ;;  %v927_v27 = vld [vmem:[%s5295_s6 + $0x1f0] sm:$0xff]  ;;  %v942_v29 = vld [vmem:[%s5295_s6 + $0x268] sm:$0xff]  ;;  %v936_v30 = vld [vmem:[%s5295_s6 + $0x238] sm:$0xff] }
  0x8a   :  { %2550 = vmatpush1.bf16.msra.mxu0 %v2549_v37  ;;  %v977_v37 = vld [vmem:[%s5295_s6 + $0x380] sm:$0xff]  ;;  %v944_v31 = vld [vmem:[%s5295_s6 + $0x278] sm:$0xff]  ;;  %v2653_v33 = vpack.c.bf16 %v927_v27, %v919_v25  ;;  %v1296_v25 = vld [vmem:[%s5297_s7 + $0x50] sm:$0xff] }
  0x8b   :  { %2582 = vmatpush1.bf16.msra.mxu1 %v2581_v48  ;;  %2552 = vmatprep.subr.bf16.mxu0 %v2551_v38  ;;  %v985_v48 = vld [vmem:[%s5295_s6 + $0x3c0] sm:$0xff]  ;;  %v979_v38 = vld [vmem:[%s5295_s6 + $0x390] sm:$0xff]  ;;  %v1311_v27 = vld [vmem:[%s5297_s7 + $0xc8] sm:$0xff] }
  0x8c   :  { %2584 = vmatprep.subr.bf16.mxu1 %v2583_v53  ;;  %v878_v53 = vld [vmem:[%s5295_s6 + $0x68] sm:$0xff]  ;;  %v2573_v44 = vpack.c.bf16 %v985_v48, %v977_v37  ;;  %v2605_v45 = vpack.c.bf16 %v987_v40, %v979_v38  ;;  %v935_v37 = vld [vmem:[%s5295_s6 + $0x230] sm:$0xff]  ;;  %v2655_v48 = vpack.c.bf16 %v944_v31, %v936_v30 }
  0x8d   :  { %v2607_v46 = vpack.c.bf16 %v878_v53, %v870_v41  ;;  %v943_v38 = vld [vmem:[%s5295_s6 + $0x270] sm:$0xff]  ;;  %v958_v40 = vld [vmem:[%s5295_s6 + $0x2e8] sm:$0xff]  ;;  %v952_v41 = vld [vmem:[%s5295_s6 + $0x2b8] sm:$0xff] }
  0x8e   :  { %2554 = vmatpush1.bf16.msra.mxu0 %v2553_v47  ;;  %v869_v47 = vld [vmem:[%s5295_s6 + $0x20] sm:$0xff]  ;;  %v960_v53 = vld [vmem:[%s5295_s6 + $0x2f8] sm:$0xff]  ;;  %v2657_v43 = vpack.c.bf16 %v943_v38, %v935_v37  ;;  %v1312_v37 = vld [vmem:[%s5297_s7 + $0xd0] sm:$0xff] }
  0x8f   :  { %2586 = vmatpush1.bf16.msra.mxu1 %v2585_v49  ;;  %2556 = vmatprep.subr.bf16.mxu0 %v2555_v50  ;;  %v877_v49 = vld [vmem:[%s5295_s6 + $0x60] sm:$0xff]  ;;  %v871_v50 = vld [vmem:[%s5295_s6 + $0x30] sm:$0xff]  ;;  %v1327_v38 = vld [vmem:[%s5297_s7 + $0x148] sm:$0xff] }
  0x90   :  { %2588 = vmatprep.subr.bf16.mxu1 %v2587_v55  ;;  %v894_v55 = vld [vmem:[%s5295_s6 + $0xe8] sm:$0xff]  ;;  %v2609_v59 = vpack.c.bf16 %v877_v49, %v869_v47  ;;  %v2641_v60 = vpack.c.bf16 %v879_v52, %v871_v50  ;;  %v951_v47 = vld [vmem:[%s5295_s6 + $0x2b0] sm:$0xff]  ;;  %v2659_v49 = vpack.c.bf16 %v960_v53, %v952_v41 }
  0x91   :  { %v959_v50 = vld [vmem:[%s5295_s6 + $0x2f0] sm:$0xff]  ;;  %v974_v52 = vld [vmem:[%s5295_s6 + $0x368] sm:$0xff] }
  0x92   :  { %2558 = vmatpush1.bf16.msra.mxu0 %v2557_v61  ;;  %v2611_v61 = vpack.c.bf16 %v894_v55, %v886_v54  ;;  %v968_v54 = vld [vmem:[%s5295_s6 + $0x338] sm:$0xff]  ;;  %v2661_v57 = vpack.c.bf16 %v959_v50, %v951_v47  ;;  %v1335_v47 = vld [vmem:[%s5297_s7 + $0x188] sm:$0xff] }
  0x93   :  { %2590 = vmatpush1.bf16.msra.mxu1 %v2589_v62  ;;  %2560 = vmatprep.subr.bf16.mxu0 %v2559_v63  ;;  %v885_v62 = vld [vmem:[%s5295_s6 + $0xa0] sm:$0xff]  ;;  %v976_v55 = vld [vmem:[%s5295_s6 + $0x378] sm:$0xff] }
  0x94   :  { %2592 = vmatprep.subr.bf16.mxu1 %v2591_v4  ;;  %v893_v63 = vld [vmem:[%s5295_s6 + $0xe0] sm:$0xff]  ;;  %v902_v4 = vld [vmem:[%s5295_s6 + $0x128] sm:$0xff]  ;;  %v1337_v50 = vld [vmem:[%s5297_s7 + $0x198] sm:$0xff] }
  0x95   :  { %v2613_v8 = vpack.c.bf16 %v893_v63, %v885_v62  ;;  %v967_v62 = vld [vmem:[%s5295_s6 + $0x330] sm:$0xff]  ;;  %v2663_v63 = vpack.c.bf16 %v976_v55, %v968_v54 }
  0x96   :  { %2562 = vmatpush1.bf16.msra.mxu0 %v2561_v10  ;;  %v2615_v10 = vpack.c.bf16 %v910_v5, %v902_v4  ;;  %v984_v4 = vld [vmem:[%s5295_s6 + $0x3b8] sm:$0xff]  ;;  %v2665_v7 = vpack.c.bf16 %v975_v0, %v967_v62  ;;  %v1291_v62 = vld [vmem:[%s5297_s7 + $0x28] sm:$0xff] }
  0x97   :  { %2594 = vmatpush1.bf16.msra.mxu1 %v2593_v11  ;;  %2564 = vmatprep.subr.bf16.mxu0 %v2563_v12  ;;  %v901_v11 = vld [vmem:[%s5295_s6 + $0x120] sm:$0xff]  ;;  %v992_v5 = vld [vmem:[%s5295_s6 + $0x3f8] sm:$0xff] }
  0x98   :  { %2596 = vmatprep.subr.bf16.mxu1 %v2595_v16  ;;  %v909_v12 = vld [vmem:[%s5295_s6 + $0x160] sm:$0xff]  ;;  %v918_v16 = vld [vmem:[%s5295_s6 + $0x1a8] sm:$0xff]  ;;  %v1293_v0 = vld [vmem:[%s5297_s7 + $0x38] sm:$0xff] }
  0x99   :  { %v2617_v20 = vpack.c.bf16 %v909_v12, %v901_v11  ;;  %v983_v11 = vld [vmem:[%s5295_s6 + $0x3b0] sm:$0xff]  ;;  %v2667_v12 = vpack.c.bf16 %v992_v5, %v984_v4 }
  0x9a   :  { %2566 = vmatpush1.bf16.msra.mxu0 %v2565_v22  ;;  %v2619_v22 = vpack.c.bf16 %v926_v17, %v918_v16  ;;  %v1289_v16 = vld [vmem:[%s5297_s7 + $0x18] sm:$0xff]  ;;  %v2669_v19 = vpack.c.bf16 %v991_v13, %v983_v11  ;;  %v1307_v11 = vld [vmem:[%s5297_s7 + $0xa8] sm:$0xff] }
  0x9b   :  { %2598 = vmatpush1.bf16.msra.mxu1 %v2597_v23  ;;  %2568 = vmatprep.subr.bf16.mxu0 %v2567_v24  ;;  %v917_v23 = vld [vmem:[%s5295_s6 + $0x1a0] sm:$0xff]  ;;  %v1297_v17 = vld [vmem:[%s5297_s7 + $0x58] sm:$0xff] }
  0x9c   :  { %2600 = vmatprep.subr.bf16.mxu1 %v2599_v28  ;;  %v925_v24 = vld [vmem:[%s5295_s6 + $0x1e0] sm:$0xff]  ;;  %v934_v28 = vld [vmem:[%s5295_s6 + $0x228] sm:$0xff]  ;;  %v1309_v13 = vld [vmem:[%s5297_s7 + $0xb8] sm:$0xff] }
  0x9d   :  { %v2621_v32 = vpack.c.bf16 %v925_v24, %v917_v23  ;;  %v1288_v23 = vld [vmem:[%s5297_s7 + $0x10] sm:$0xff]  ;;  %v2687_v24 = vpack.c.bf16 %v1297_v17, %v1289_v16 }
  0x9e   :  { %2570 = vmatpush1.bf16.msra.mxu0 %v2569_v34  ;;  %v2623_v34 = vpack.c.bf16 %v942_v29, %v934_v28  ;;  %v1305_v28 = vld [vmem:[%s5297_s7 + $0x98] sm:$0xff]  ;;  %v2689_v31 = vpack.c.bf16 %v1296_v25, %v1288_v23  ;;  %v1316_v23 = vld [vmem:[%s5297_s7 + $0xf0] sm:$0xff]  ;;  %v1331_v25 = vld [vmem:[%s5297_s7 + $0x168] sm:$0xff] }
  0x9f   :  { %2602 = vmatpush1.bf16.msra.mxu1 %v2601_v35  ;;  %2572 = vmatprep.subr.bf16.mxu0 %v2571_v36  ;;  %v933_v35 = vld [vmem:[%s5295_s6 + $0x220] sm:$0xff]  ;;  %v1313_v29 = vld [vmem:[%s5297_s7 + $0xd8] sm:$0xff] }
  0xa0   :  { %2604 = vmatprep.subr.bf16.mxu1 %v2603_v39  ;;  %v941_v36 = vld [vmem:[%s5295_s6 + $0x260] sm:$0xff]  ;;  %v950_v39 = vld [vmem:[%s5295_s6 + $0x2a8] sm:$0xff] }
  0xa1   :  { %v2625_v42 = vpack.c.bf16 %v941_v36, %v933_v35  ;;  %v1304_v35 = vld [vmem:[%s5297_s7 + $0x90] sm:$0xff]  ;;  %v2691_v36 = vpack.c.bf16 %v1313_v29, %v1305_v28 }
  0xa2   :  { %2574 = vmatpush1.bf16.msra.mxu0 %v2573_v44  ;;  %v2627_v44 = vpack.c.bf16 %v958_v40, %v950_v39  ;;  %v1321_v39 = vld [vmem:[%s5297_s7 + $0x118] sm:$0xff]  ;;  %v2693_v53 = vpack.c.bf16 %v1312_v37, %v1304_v35  ;;  %v1332_v35 = vld [vmem:[%s5297_s7 + $0x170] sm:$0xff]  ;;  %v1347_v37 = vld [vmem:[%s5297_s7 + $0x1e8] sm:$0xff] }
  0xa3   :  { %2606 = vmatpush1.bf16.msra.mxu1 %v2605_v45  ;;  %2608 = vmatprep.subr.bf16.mxu0 %v2607_v46  ;;  %v949_v45 = vld [vmem:[%s5295_s6 + $0x2a0] sm:$0xff]  ;;  %v1329_v40 = vld [vmem:[%s5297_s7 + $0x158] sm:$0xff] }
  0xa4   :  { %2640 = vmatprep.subr.bf16.mxu1 %v2639_v51  ;;  %v957_v46 = vld [vmem:[%s5295_s6 + $0x2e0] sm:$0xff]  ;;  %v966_v51 = vld [vmem:[%s5295_s6 + $0x328] sm:$0xff] }
  0xa5   :  { %1058 = vmatmul.mubr.f32.vlgmr.msra.gmra.mrb[0].mxu0 %v4114_v58  ;;  %v2629_v56 = vpack.c.bf16 %v957_v46, %v949_v45  ;;  %v1320_v45 = vld [vmem:[%s5297_s7 + $0x110] sm:$0xff] }
  0xa6   :  { %1129 = vmatmul.mubr.f32.vlgmr.msra.gmra.mrb[0].mxu1 %v4114_v58  ;;  %2610 = vmatpush1.bf16.msra.mxu0 %v2609_v59  ;;  %v2631_v59 = vpack.c.bf16 %v974_v52, %v966_v51  ;;  %v1328_v46 = vld [vmem:[%s5297_s7 + $0x150] sm:$0xff]  ;;  %v1345_v51 = vld [vmem:[%s5297_s7 + $0x1d8] sm:$0xff] }
  0xa7   :  { %2642 = vmatpush1.bf16.msra.mxu1 %v2641_v60  ;;  %2612 = vmatprep.subr.bf16.mxu0 %v2611_v61  ;;  %v965_v60 = vld [vmem:[%s5295_s6 + $0x320] sm:$0xff]  ;;  %v2697_v54 = vpack.c.bf16 %v1328_v46, %v1320_v45  ;;  %v1833_v45 = vld [vmem:[%s5299_s9 + $0x408] sm:$0xff] }
  0xa8   :  { %2644 = vmatprep.subr.bf16.mxu1 %v2643_v1  ;;  %1199 = vmatprep.mubr.f32.mxu0 %v3025_v3  ;;  %v973_v61 = vld [vmem:[%s5295_s6 + $0x360] sm:$0xff]  ;;  %v982_v1 = vld [vmem:[%s5295_s6 + $0x3a8] sm:$0xff] }
  0xa9   :  { %1270 = vmatprep.mubr.f32.mxu1 %v3025_v3  ;;  %v2633_v6 = vpack.c.bf16 %v973_v61, %v965_v60  ;;  %v2699_v60 = vpack.c.bf16 %v1345_v51, %v1337_v50  ;;  %v1344_v61 = vld [vmem:[%s5297_s7 + $0x1d0] sm:$0xff]  ;;  %v1705_v46 = vld [vmem:[%s5299_s9 + $0x8] sm:$0xff]  ;;  %v1704_v51 = vld [vmem:[%s5299_s9] sm:$0xff] }
  0xaa   :  { %2614 = vmatpush1.bf16.msra.mxu0 %v2613_v8  ;;  %v2635_v8 = vpack.c.bf16 %v990_v2, %v982_v1  ;;  %v1301_v1 = vld [vmem:[%s5297_s7 + $0x78] sm:$0xff] }
  0xab   :  { %2646 = vmatpush1.bf16.msra.mxu1 %v2645_v9  ;;  %2616 = vmatprep.subr.bf16.mxu0 %v2615_v10  ;;  %v981_v9 = vld [vmem:[%s5295_s6 + $0x3a0] sm:$0xff] }
  0xac   :  { %2648 = vmatprep.subr.bf16.mxu1 %v2647_v14  ;;  %v989_v10 = vld [vmem:[%s5295_s6 + $0x3e0] sm:$0xff]  ;;  %v1287_v14 = vld [vmem:[%s5297_s7 + $0x8] sm:$0xff] }
  0xad   :  { %v2637_v18 = vpack.c.bf16 %v989_v10, %v981_v9  ;;  %v2719_v9 = vpack.c.bf16 %v1301_v1, %v1293_v0  ;;  %v1300_v10 = vld [vmem:[%s5297_s7 + $0x70] sm:$0xff]  ;;  %v1708_v1 = vld [vmem:[%s5299_s9 + $0x20] sm:$0xff] }
  0xae   :  { %2618 = vmatpush1.bf16.msra.mxu0 %v2617_v20  ;;  %v2671_v20 = vpack.c.bf16 %v1295_v15, %v1287_v14  ;;  %v1317_v14 = vld [vmem:[%s5297_s7 + $0xf8] sm:$0xff]  ;;  %v4415_v15 = vld [vmem:[%s5298_s3] sm:$0x1] }
  0xaf   :  { %2650 = vmatpush1.bf16.msra.mxu1 %v2649_v21  ;;  %2620 = vmatprep.subr.bf16.mxu0 %v2619_v22  ;;  %v1286_v21 = vld [vmem:[%s5297_s7] sm:$0xff] }
  0xb0   :  { %2652 = vmatprep.subr.bf16.mxu1 %v2651_v26  ;;  %v1294_v22 = vld [vmem:[%s5297_s7 + $0x40] sm:$0xff]  ;;  %v1303_v26 = vld [vmem:[%s5297_s7 + $0x88] sm:$0xff] }
  0xb1   :  { %v2673_v30 = vpack.c.bf16 %v1294_v22, %v1286_v21  ;;  %v1308_v21 = vld [vmem:[%s5297_s7 + $0xb0] sm:$0xff]  ;;  %v2723_v22 = vpack.c.bf16 %v1317_v14, %v1309_v13  ;;  %v1712_v14 = vld [vmem:[%s5299_s9 + $0x40] sm:$0xff] }
  0xb2   :  { %2622 = vmatpush1.bf16.msra.mxu0 %v2621_v32  ;;  %v2675_v32 = vpack.c.bf16 %v1311_v27, %v1303_v26  ;;  %v1325_v26 = vld [vmem:[%s5297_s7 + $0x138] sm:$0xff]  ;;  %v2725_v29 = vpack.c.bf16 %v1316_v23, %v1308_v21 }
  0xb3   :  { %2654 = vmatpush1.bf16.msra.mxu1 %v2653_v33  ;;  %2624 = vmatprep.subr.bf16.mxu0 %v2623_v34  ;;  %v1302_v33 = vld [vmem:[%s5297_s7 + $0x80] sm:$0xff]  ;;  %v1333_v27 = vld [vmem:[%s5297_s7 + $0x178] sm:$0xff] }
  0xb4   :  { %2656 = vmatprep.subr.bf16.mxu1 %v2655_v48  ;;  %v1310_v34 = vld [vmem:[%s5297_s7 + $0xc0] sm:$0xff]  ;;  %v1319_v48 = vld [vmem:[%s5297_s7 + $0x108] sm:$0xff]  ;;  %v1847_v21 = vld [vmem:[%s5299_s9 + $0x478] sm:$0xff] }
  0xb5   :  { %v2677_v41 = vpack.c.bf16 %v1310_v34, %v1302_v33  ;;  %v1324_v33 = vld [vmem:[%s5297_s7 + $0x130] sm:$0xff]  ;;  %v2727_v34 = vpack.c.bf16 %v1333_v27, %v1325_v26  ;;  %v1719_v23 = vld [vmem:[%s5299_s9 + $0x78] sm:$0xff]  ;;  %v1716_v26 = vld [vmem:[%s5299_s9 + $0x60] sm:$0xff] }
  0xb6   :  { %2626 = vmatpush1.bf16.msra.mxu0 %v2625_v42  ;;  %v2679_v42 = vpack.c.bf16 %v1327_v38, %v1319_v48  ;;  %v1341_v48 = vld [vmem:[%s5297_s7 + $0x1b8] sm:$0xff] }
  0xb7   :  { %2658 = vmatpush1.bf16.msra.mxu1 %v2657_v43  ;;  %2628 = vmatprep.subr.bf16.mxu0 %v2627_v44  ;;  %v1318_v43 = vld [vmem:[%s5297_s7 + $0x100] sm:$0xff]  ;;  %v1349_v38 = vld [vmem:[%s5297_s7 + $0x1f8] sm:$0xff] }
  0xb8   :  { %2660 = vmatprep.subr.bf16.mxu1 %v2659_v49  ;;  %v1326_v44 = vld [vmem:[%s5297_s7 + $0x140] sm:$0xff]  ;;  %v1343_v49 = vld [vmem:[%s5297_s7 + $0x1c8] sm:$0xff] }
  0xb9   :  { %v2681_v52 = vpack.c.bf16 %v1326_v44, %v1318_v43  ;;  %v2683_v55 = vpack.c.bf16 %v1343_v49, %v1335_v47  ;;  %v1340_v43 = vld [vmem:[%s5297_s7 + $0x1b0] sm:$0xff]  ;;  %v1707_v47 = vld [vmem:[%s5299_s9 + $0x18] sm:$0xff] }
  0xba   :  { %2630 = vmatpush1.bf16.msra.mxu0 %v2629_v56  ;;  %v1334_v56 = vld [vmem:[%s5297_s7 + $0x180] sm:$0xff]  ;;  %v1348_v44 = vld [vmem:[%s5297_s7 + $0x1f0] sm:$0xff] }
  0xbb   :  { %2662 = vmatpush1.bf16.msra.mxu1 %v2661_v57  ;;  %2632 = vmatprep.subr.bf16.mxu0 %v2631_v59  ;;  %v1342_v57 = vld [vmem:[%s5297_s7 + $0x1c0] sm:$0xff]  ;;  %v1336_v59 = vld [vmem:[%s5297_s7 + $0x190] sm:$0xff]  ;;  %v2733_v50 = vpack.c.bf16 %v1348_v44, %v1340_v43  ;;  %v1855_v43 = vld [vmem:[%s5299_s9 + $0x4b8] sm:$0xff] }
  0xbc   :  { %2664 = vmatprep.subr.bf16.mxu1 %v2663_v63  ;;  %v1299_v63 = vld [vmem:[%s5297_s7 + $0x68] sm:$0xff]  ;;  %v2685_v2 = vpack.c.bf16 %v1342_v57, %v1334_v56  ;;  %v2701_v4 = vpack.c.bf16 %v1344_v61, %v1336_v59  ;;  %v2735_v56 = vpack.c.bf16 %v1707_v47, %v1705_v46  ;;  %v1706_v57 = vld [vmem:[%s5299_s9 + $0x10] sm:$0xff]  ;;  %v1727_v44 = vld [vmem:[%s5299_s9 + $0xb8] sm:$0xff] }
  0xbd   :  { %v2703_v5 = vpack.c.bf16 %v1299_v63, %v1291_v62  ;;  %v1837_v59 = vld [vmem:[%s5299_s9 + $0x428] sm:$0xff]  ;;  %v1711_v62 = vld [vmem:[%s5299_s9 + $0x38] sm:$0xff]  ;;  %v2737_v0 = vpack.c.bf16 %v1706_v57, %v1704_v51  ;;  %v1724_v46 = vld [vmem:[%s5299_s9 + $0xa0] sm:$0xff] }
  0xbe   :  { %2634 = vmatpush1.bf16.msra.mxu0 %v2633_v6  ;;  %v1290_v6 = vld [vmem:[%s5297_s7 + $0x20] sm:$0xff]  ;;  %v1709_v61 = vld [vmem:[%s5299_s9 + $0x28] sm:$0xff]  ;;  %v1731_v57 = vld [vmem:[%s5299_s9 + $0xd8] sm:$0xff] }
  0xbf   :  { %2666 = vmatpush1.bf16.msra.mxu1 %v2665_v7  ;;  %2636 = vmatprep.subr.bf16.mxu0 %v2635_v8  ;;  %v1298_v7 = vld [vmem:[%s5297_s7 + $0x60] sm:$0xff]  ;;  %v1292_v8 = vld [vmem:[%s5297_s7 + $0x30] sm:$0xff] }
  0xc0   :  { %2668 = vmatprep.subr.bf16.mxu1 %v2667_v12  ;;  %v1315_v12 = vld [vmem:[%s5297_s7 + $0xe8] sm:$0xff]  ;;  %v2705_v16 = vpack.c.bf16 %v1298_v7, %v1290_v6  ;;  %v2721_v17 = vpack.c.bf16 %v1300_v10, %v1292_v8  ;;  %v2739_v6 = vpack.c.bf16 %v1711_v62, %v1709_v61  ;;  %v1710_v7 = vld [vmem:[%s5299_s9 + $0x30] sm:$0xff]  ;;  %v1728_v61 = vld [vmem:[%s5299_s9 + $0xc0] sm:$0xff] }
  0xc1   :  { %v1841_v8 = vld [vmem:[%s5299_s9 + $0x448] sm:$0xff]  ;;  %v2741_v13 = vpack.c.bf16 %v1710_v7, %v1708_v1  ;;  %v1735_v7 = vld [vmem:[%s5299_s9 + $0xf8] sm:$0xff] }
  0xc2   :  { %2638 = vmatpush1.bf16.msra.mxu0 %v2637_v18  ;;  %v2707_v18 = vpack.c.bf16 %v1315_v12, %v1307_v11  ;;  %v1713_v10 = vld [vmem:[%s5299_s9 + $0x48] sm:$0xff]  ;;  %v1715_v11 = vld [vmem:[%s5299_s9 + $0x58] sm:$0xff] }
  0xc3   :  { %2670 = vmatpush1.bf16.msra.mxu1 %v2669_v19  ;;  %2672 = vmatprep.subr.bf16.mxu0 %v2671_v20  ;;  %v1306_v19 = vld [vmem:[%s5297_s7 + $0xa0] sm:$0xff] }
  0xc4   :  { %2688 = vmatprep.subr.bf16.mxu1 %v2687_v24  ;;  %v1314_v20 = vld [vmem:[%s5297_s7 + $0xe0] sm:$0xff]  ;;  %v1323_v24 = vld [vmem:[%s5297_s7 + $0x128] sm:$0xff] }
  0xc5   :  { %1200 = vmatmul.mubr.f32.vlgmr.msra.gmra.mrb[2].mxu0 %v4114_v58  ;;  %v2709_v28 = vpack.c.bf16 %v1314_v20, %v1306_v19  ;;  %v1714_v19 = vld [vmem:[%s5299_s9 + $0x50] sm:$0xff]  ;;  %v1845_v20 = vld [vmem:[%s5299_s9 + $0x468] sm:$0xff] }
  0xc6   :  { %1271 = vmatmul.mubr.f32.vlgmr.msra.gmra.mrb[2].mxu1 %v4114_v58  ;;  %2674 = vmatpush1.bf16.msra.mxu0 %v2673_v30  ;;  %v2695_v58 = vpack.c.bf16 %v1329_v40, %v1321_v39  ;;  %v2711_v30 = vpack.c.bf16 %v1331_v25, %v1323_v24  ;;  %v2729_v40 = vpack.c.bf16 %v1332_v35, %v1324_v33  ;;  %v1851_v33 = vld [vmem:[%s5299_s9 + $0x498] sm:$0xff] }
  0xc7   :  { %2690 = vmatpush1.bf16.msra.mxu1 %v2689_v31  ;;  %2676 = vmatprep.subr.bf16.mxu0 %v2675_v32  ;;  %v1322_v31 = vld [vmem:[%s5297_s7 + $0x120] sm:$0xff]  ;;  %v2745_v25 = vpack.c.bf16 %v1714_v19, %v1712_v14  ;;  %v2875_v27 = vpack.c.bf16 %v1847_v21, %v1845_v20  ;;  %v1723_v35 = vld [vmem:[%s5299_s9 + $0x98] sm:$0xff] }
  0xc8   :  { %2692 = vmatprep.subr.bf16.mxu1 %v2691_v36  ;;  %1418 = vmatprep.mubr.f32.mxu0 %v3025_v3  ;;  %v1330_v32 = vld [vmem:[%s5297_s7 + $0x160] sm:$0xff]  ;;  %v1339_v36 = vld [vmem:[%s5297_s7 + $0x1a8] sm:$0xff]  ;;  %v1739_v19 = vld [vmem:[%s5299_s9 + $0x118] sm:$0xff] }
  0xc9   :  { %1489 = vmatprep.mubr.f32.mxu1 %v3025_v3  ;;  %v2713_v39 = vpack.c.bf16 %v1330_v32, %v1322_v31  ;;  %v1718_v31 = vld [vmem:[%s5299_s9 + $0x70] sm:$0xff]  ;;  %v1849_v32 = vld [vmem:[%s5299_s9 + $0x488] sm:$0xff] }
  0xca   :  { %2678 = vmatpush1.bf16.msra.mxu0 %v2677_v41  ;;  %v2715_v41 = vpack.c.bf16 %v1347_v37, %v1339_v36  ;;  %v2749_v37 = vpack.c.bf16 %v1718_v31, %v1716_v26  ;;  %v1743_v31 = vld [vmem:[%s5299_s9 + $0x138] sm:$0xff] }
  0xcb   :  { %2694 = vmatpush1.bf16.msra.mxu1 %v2693_v53  ;;  %2680 = vmatprep.subr.bf16.mxu0 %v2679_v42  ;;  %v1338_v53 = vld [vmem:[%s5297_s7 + $0x1a0] sm:$0xff] }
  0xcc   :  { %2696 = vmatprep.subr.bf16.mxu1 %v2695_v58  ;;  %v1346_v42 = vld [vmem:[%s5297_s7 + $0x1e0] sm:$0xff]  ;;  %v1835_v58 = vld [vmem:[%s5299_s9 + $0x418] sm:$0xff] }
  0xcd   :  { %v2717_v49 = vpack.c.bf16 %v1346_v42, %v1338_v53  ;;  %v1722_v53 = vld [vmem:[%s5299_s9 + $0x90] sm:$0xff]  ;;  %v1853_v42 = vld [vmem:[%s5299_s9 + $0x4a8] sm:$0xff] }
  0xce   :  { %2682 = vmatpush1.bf16.msra.mxu0 %v2681_v52  ;;  %v2863_v52 = vpack.c.bf16 %v1835_v58, %v1833_v45  ;;  %v2883_v47 = vpack.c.bf16 %v1855_v43, %v1853_v42 }
  0xcf   :  { %2698 = vmatpush1.bf16.msra.mxu1 %v2697_v54  ;;  %2684 = vmatprep.subr.bf16.mxu0 %v2683_v55  ;;  %v1832_v54 = vld [vmem:[%s5299_s9 + $0x400] sm:$0xff]  ;;  %v1834_v55 = vld [vmem:[%s5299_s9 + $0x410] sm:$0xff] }
  0xd0   :  { %2700 = vmatprep.subr.bf16.mxu1 %v2699_v60  ;;  %v1839_v60 = vld [vmem:[%s5299_s9 + $0x438] sm:$0xff]  ;;  %v2865_v63 = vpack.c.bf16 %v1834_v55, %v1832_v54  ;;  %v1857_v54 = vld [vmem:[%s5299_s9 + $0x4c8] sm:$0xff] }
  0xd1   :  { %v1859_v55 = vld [vmem:[%s5299_s9 + $0x4d8] sm:$0xff] }
  0xd2   :  { %2686 = vmatpush1.bf16.msra.mxu0 %v2685_v2  ;;  %v2867_v2 = vpack.c.bf16 %v1839_v60, %v1837_v59  ;;  %v2887_v62 = vpack.c.bf16 %v1859_v55, %v1857_v54  ;;  %v1748_v55 = vld [vmem:[%s5299_s9 + $0x160] sm:$0xff] }
  0xd3   :  { %2702 = vmatpush1.bf16.msra.mxu1 %v2701_v4  ;;  %2704 = vmatprep.subr.bf16.mxu0 %v2703_v5  ;;  %v1836_v4 = vld [vmem:[%s5299_s9 + $0x420] sm:$0xff]  ;;  %v1838_v5 = vld [vmem:[%s5299_s9 + $0x430] sm:$0xff] }
  0xd4   :  { %2720 = vmatprep.subr.bf16.mxu1 %v2719_v9  ;;  %v1843_v9 = vld [vmem:[%s5299_s9 + $0x458] sm:$0xff]  ;;  %v2869_v12 = vpack.c.bf16 %v1838_v5, %v1836_v4  ;;  %v1861_v4 = vld [vmem:[%s5299_s9 + $0x4e8] sm:$0xff] }
  0xd5   :  { %2283 = vmatmul.mubr.msk.f32.vlgmr.msra.gmra.mrb[0].mxu0 %vm1350_vm0, %v4415_v15  ;;  %v1863_v5 = vld [vmem:[%s5299_s9 + $0x4f8] sm:$0xff] }
  0xd6   :  { %2284 = vmatmul.mubr.msk.f32.vlgmr.msra.gmra.mrb[0].mxu1 %vm1350_vm0, %v4415_v15  ;;  %2706 = vmatpush1.bf16.msra.mxu0 %v2705_v16  ;;  %v2871_v16 = vpack.c.bf16 %v1843_v9, %v1841_v8 }
  0xd7   :  { %2722 = vmatpush1.bf16.msra.mxu1 %v2721_v17  ;;  %2708 = vmatprep.subr.bf16.mxu0 %v2707_v18  ;;  %v1840_v17 = vld [vmem:[%s5299_s9 + $0x440] sm:$0xff]  ;;  %v1842_v18 = vld [vmem:[%s5299_s9 + $0x450] sm:$0xff] }
  0xd8   :  { %2724 = vmatprep.subr.bf16.mxu1 %v2723_v22  ;;  %1560 = vmatprep.mubr.f32.mxu0 %v3025_v3  ;;  %v1717_v22 = vld [vmem:[%s5299_s9 + $0x68] sm:$0xff]  ;;  %v2873_v24 = vpack.c.bf16 %v1842_v18, %v1840_v17  ;;  %v1867_v18 = vld [vmem:[%s5299_s9 + $0x518] sm:$0xff] }
  0xd9   :  { %1631 = vmatprep.mubr.f32.mxu1 %v3025_v3  ;;  %v2731_v3 = vpack.c.bf16 %v1349_v38, %v1341_v48  ;;  %v1720_v48 = vld [vmem:[%s5299_s9 + $0x80] sm:$0xff]  ;;  %v2879_v38 = vpack.c.bf16 %v1851_v33, %v1849_v32  ;;  %v1865_v17 = vld [vmem:[%s5299_s9 + $0x508] sm:$0xff] }
  0xda   :  { %2710 = vmatpush1.bf16.msra.mxu0 %v2709_v28  ;;  %v1844_v28 = vld [vmem:[%s5299_s9 + $0x460] sm:$0xff]  ;;  %v2753_v58 = vpack.c.bf16 %v1722_v53, %v1720_v48  ;;  %v1747_v53 = vld [vmem:[%s5299_s9 + $0x158] sm:$0xff] }
  0xdb   :  { %2726 = vmatpush1.bf16.msra.mxu1 %v2725_v29  ;;  %2712 = vmatprep.subr.bf16.mxu0 %v2711_v30  ;;  %v1846_v29 = vld [vmem:[%s5299_s9 + $0x470] sm:$0xff]  ;;  %v2747_v30 = vpack.c.bf16 %v1719_v23, %v1717_v22  ;;  %v1736_v22 = vld [vmem:[%s5299_s9 + $0x100] sm:$0xff]  ;;  %v2895_v23 = vpack.c.bf16 %v1867_v18, %v1865_v17  ;;  %v1877_v17 = vld [vmem:[%s5299_s9 + $0x568] sm:$0xff] }
  0xdc   :  { %2728 = vmatprep.subr.bf16.mxu1 %v2727_v34  ;;  %v1721_v34 = vld [vmem:[%s5299_s9 + $0x88] sm:$0xff]  ;;  %v2877_v36 = vpack.c.bf16 %v1846_v29, %v1844_v28  ;;  %v1871_v29 = vld [vmem:[%s5299_s9 + $0x538] sm:$0xff] }
  0xdd   :  { %v1869_v28 = vld [vmem:[%s5299_s9 + $0x528] sm:$0xff] }
  0xde   :  { %2714 = vmatpush1.bf16.msra.mxu0 %v2713_v39  ;;  %v1848_v39 = vld [vmem:[%s5299_s9 + $0x480] sm:$0xff] }
  0xdf   :  { %2730 = vmatpush1.bf16.msra.mxu1 %v2729_v40  ;;  %2716 = vmatprep.subr.bf16.mxu0 %v2715_v41  ;;  %v1850_v40 = vld [vmem:[%s5299_s9 + $0x490] sm:$0xff]  ;;  %v2751_v41 = vpack.c.bf16 %v1723_v35, %v1721_v34  ;;  %v1740_v34 = vld [vmem:[%s5299_s9 + $0x120] sm:$0xff]  ;;  %v2899_v35 = vpack.c.bf16 %v1871_v29, %v1869_v28  ;;  %v1881_v28 = vld [vmem:[%s5299_s9 + $0x588] sm:$0xff] }
  0xe0   :  { %2732 = vmatprep.subr.bf16.mxu1 %v2731_v3  ;;  %v1725_v3 = vld [vmem:[%s5299_s9 + $0xa8] sm:$0xff]  ;;  %v2881_v45 = vpack.c.bf16 %v1850_v40, %v1848_v39  ;;  %v1875_v40 = vld [vmem:[%s5299_s9 + $0x558] sm:$0xff] }
  0xe1   :  { %v2755_v51 = vpack.c.bf16 %v1727_v44, %v1725_v3  ;;  %v1873_v39 = vld [vmem:[%s5299_s9 + $0x548] sm:$0xff]  ;;  %v1872_v44 = vld [vmem:[%s5299_s9 + $0x540] sm:$0xff] }
  0xe2   :  { %2718 = vmatpush1.bf16.msra.mxu0 %v2717_v49  ;;  %v1852_v49 = vld [vmem:[%s5299_s9 + $0x4a0] sm:$0xff]  ;;  %v2903_v3 = vpack.c.bf16 %v1875_v40, %v1873_v39  ;;  %v1889_v40 = vld [vmem:[%s5299_s9 + $0x5c8] sm:$0xff] }
  0xe3   :  { %2734 = vmatpush1.bf16.msra.mxu1 %v2733_v50  ;;  %2864 = vmatprep.subr.bf16.mxu0 %v2863_v52  ;;  %v1854_v50 = vld [vmem:[%s5299_s9 + $0x4b0] sm:$0xff] }
  0xe4   :  { %2736 = vmatprep.subr.bf16.mxu1 %v2735_v56  ;;  %v1726_v52 = vld [vmem:[%s5299_s9 + $0xb0] sm:$0xff]  ;;  %v1729_v56 = vld [vmem:[%s5299_s9 + $0xc8] sm:$0xff]  ;;  %v2885_v59 = vpack.c.bf16 %v1854_v50, %v1852_v49  ;;  %v1751_v50 = vld [vmem:[%s5299_s9 + $0x178] sm:$0xff] }
  0xe5   :  { %2285 = vmatmul.mubr.msk.f32.vlgmr.msra.gmra.mrb[2].mxu0 %vm1350_vm0, %v4415_v15  ;;  %v2757_v60 = vpack.c.bf16 %v1726_v52, %v1724_v46  ;;  %v2759_v1 = vpack.c.bf16 %v1731_v57, %v1729_v56  ;;  %v1744_v46 = vld [vmem:[%s5299_s9 + $0x140] sm:$0xff]  ;;  %v1749_v49 = vld [vmem:[%s5299_s9 + $0x168] sm:$0xff]  ;;  %v1750_v56 = vld [vmem:[%s5299_s9 + $0x170] sm:$0xff] }
  0xe6   :  { %2286 = vmatmul.mubr.msk.f32.vlgmr.msra.gmra.mrb[2].mxu1 %vm1350_vm0, %v4415_v15  ;;  %2866 = vmatpush1.bf16.msra.mxu0 %v2865_v63  ;;  %v2743_v15 = vpack.c.bf16 %v1715_v11, %v1713_v10  ;;  %v1856_v63 = vld [vmem:[%s5299_s9 + $0x4c0] sm:$0xff]  ;;  %v2891_v11 = vpack.c.bf16 %v1863_v5, %v1861_v4  ;;  %v2779_v54 = vpack.c.bf16 %v1751_v50, %v1749_v49  ;;  %v1753_v57 = vld [vmem:[%s5299_s9 + $0x188] sm:$0xff] }
  0xe7   :  { %2738 = vmatpush1.bf16.msra.mxu1 %v2737_v0  ;;  %2868 = vmatprep.subr.bf16.mxu0 %v2867_v2  ;;  %v1858_v0 = vld [vmem:[%s5299_s9 + $0x4d0] sm:$0xff]  ;;  %v1732_v10 = vld [vmem:[%s5299_s9 + $0xe0] sm:$0xff]  ;;  %v1897_v50 = vld [vmem:[%s5299_s9 + $0x608] sm:$0xff] }
  0xe8   :  { %2740 = vmatprep.subr.bf16.mxu1 %v2739_v6  ;;  %v1730_v2 = vld [vmem:[%s5299_s9 + $0xd0] sm:$0xff]  ;;  %v1733_v6 = vld [vmem:[%s5299_s9 + $0xe8] sm:$0xff]  ;;  %v2889_v8 = vpack.c.bf16 %v1858_v0, %v1856_v63  ;;  %v1756_v5 = vld [vmem:[%s5299_s9 + $0x1a0] sm:$0xff] }
  0xe9   :  { %v2761_v9 = vpack.c.bf16 %v1730_v2, %v1728_v61  ;;  %v2763_v14 = vpack.c.bf16 %v1735_v7, %v1733_v6  ;;  %v1754_v63 = vld [vmem:[%s5299_s9 + $0x190] sm:$0xff]  ;;  %v1757_v0 = vld [vmem:[%s5299_s9 + $0x1a8] sm:$0xff] }
  0xea   :  { %2870 = vmatpush1.bf16.msra.mxu0 %v2869_v12  ;;  %v1860_v12 = vld [vmem:[%s5299_s9 + $0x4e0] sm:$0xff]  ;;  %v1758_v6 = vld [vmem:[%s5299_s9 + $0x1b0] sm:$0xff]  ;;  %v1761_v7 = vld [vmem:[%s5299_s9 + $0x1c8] sm:$0xff] }
  0xeb   :  { %2742 = vmatpush1.bf16.msra.mxu1 %v2741_v13  ;;  %2872 = vmatprep.subr.bf16.mxu0 %v2871_v16  ;;  %v1862_v13 = vld [vmem:[%s5299_s9 + $0x4f0] sm:$0xff] }
  0xec   :  { %2744 = vmatprep.subr.bf16.mxu1 %v2743_v15  ;;  %v1734_v16 = vld [vmem:[%s5299_s9 + $0xf0] sm:$0xff]  ;;  %v1737_v15 = vld [vmem:[%s5299_s9 + $0x108] sm:$0xff]  ;;  %v2893_v20 = vpack.c.bf16 %v1862_v13, %v1860_v12 }
  0xed   :  { %v2765_v21 = vpack.c.bf16 %v1734_v16, %v1732_v10  ;;  %v2767_v26 = vpack.c.bf16 %v1739_v19, %v1737_v15  ;;  %v1762_v12 = vld [vmem:[%s5299_s9 + $0x1d0] sm:$0xff]  ;;  %v1767_v16 = vld [vmem:[%s5299_s9 + $0x1f8] sm:$0xff]  ;;  %v1764_v19 = vld [vmem:[%s5299_s9 + $0x1e0] sm:$0xff] }
  0xee   :  { %2874 = vmatpush1.bf16.msra.mxu0 %v2873_v24  ;;  %v1864_v24 = vld [vmem:[%s5299_s9 + $0x500] sm:$0xff]  ;;  %v1879_v15 = vld [vmem:[%s5299_s9 + $0x578] sm:$0xff] }
  0xef   :  { %2746 = vmatpush1.bf16.msra.mxu1 %v2745_v25  ;;  %2876 = vmatprep.subr.bf16.mxu0 %v2875_v27  ;;  %v1866_v25 = vld [vmem:[%s5299_s9 + $0x510] sm:$0xff] }
  0xf0   :  { %2748 = vmatprep.subr.bf16.mxu1 %v2747_v30  ;;  %v1738_v27 = vld [vmem:[%s5299_s9 + $0x110] sm:$0xff]  ;;  %v1741_v30 = vld [vmem:[%s5299_s9 + $0x128] sm:$0xff]  ;;  %v2897_v32 = vpack.c.bf16 %v1866_v25, %v1864_v24 }
  0xf1   :  { %v2769_v33 = vpack.c.bf16 %v1738_v27, %v1736_v22  ;;  %v2771_v48 = vpack.c.bf16 %v1743_v31, %v1741_v30  ;;  %v1878_v24 = vld [vmem:[%s5299_s9 + $0x570] sm:$0xff]  ;;  %v1771_v27 = vld [vmem:[%s5299_s9 + $0x218] sm:$0xff] }
  0xf2   :  { %2878 = vmatpush1.bf16.msra.mxu0 %v2877_v36  ;;  %v1868_v36 = vld [vmem:[%s5299_s9 + $0x520] sm:$0xff]  ;;  %v1883_v30 = vld [vmem:[%s5299_s9 + $0x598] sm:$0xff] }
  0xf3   :  { %2750 = vmatpush1.bf16.msra.mxu1 %v2749_v37  ;;  %2880 = vmatprep.subr.bf16.mxu0 %v2879_v38  ;;  %v1870_v37 = vld [vmem:[%s5299_s9 + $0x530] sm:$0xff]  ;;  %v2911_v31 = vpack.c.bf16 %v1883_v30, %v1881_v28 }
  0xf4   :  { %2752 = vmatprep.subr.bf16.mxu1 %v2751_v41  ;;  %v1742_v38 = vld [vmem:[%s5299_s9 + $0x130] sm:$0xff]  ;;  %v1745_v41 = vld [vmem:[%s5299_s9 + $0x148] sm:$0xff]  ;;  %v2901_v42 = vpack.c.bf16 %v1870_v37, %v1868_v36  ;;  %v1887_v36 = vld [vmem:[%s5299_s9 + $0x5b8] sm:$0xff] }
  0xf5   :  { %v2773_v43 = vpack.c.bf16 %v1742_v38, %v1740_v34  ;;  %v1886_v38 = vld [vmem:[%s5299_s9 + $0x5b0] sm:$0xff] }
  0xf6   :  { %2882 = vmatpush1.bf16.msra.mxu0 %v2881_v45  ;;  %v1874_v45 = vld [vmem:[%s5299_s9 + $0x550] sm:$0xff] }
  0xf7   :  { %2754 = vmatpush1.bf16.msra.mxu1 %v2753_v58  ;;  %2884 = vmatprep.subr.bf16.mxu0 %v2883_v47  ;;  %v2775_v58 = vpack.c.bf16 %v1747_v53, %v1745_v41  ;;  %v1746_v47 = vld [vmem:[%s5299_s9 + $0x150] sm:$0xff]  ;;  %v1891_v41 = vld [vmem:[%s5299_s9 + $0x5d8] sm:$0xff] }
  0xf8   :  { %2756 = vmatprep.subr.bf16.mxu1 %v2755_v51  ;;  %v2905_v51 = vpack.c.bf16 %v1874_v45, %v1872_v44  ;;  %v2777_v52 = vpack.c.bf16 %v1746_v47, %v1744_v46  ;;  %v2919_v53 = vpack.c.bf16 %v1891_v41, %v1889_v40  ;;  %v1893_v44 = vld [vmem:[%s5299_s9 + $0x5e8] sm:$0xff]  ;;  %v1895_v45 = vld [vmem:[%s5299_s9 + $0x5f8] sm:$0xff]  ;;  %v1892_v46 = vld [vmem:[%s5299_s9 + $0x5e0] sm:$0xff] }
  0xf9   :  { %v1894_v47 = vld [vmem:[%s5299_s9 + $0x5f0] sm:$0xff]  ;;  %v1785_v40 = vld [vmem:[%s5299_s9 + $0x288] sm:$0xff]  ;;  %v1787_v41 = vld [vmem:[%s5299_s9 + $0x298] sm:$0xff] }
  0xfa   :  { %2886 = vmatpush1.bf16.msra.mxu0 %v2885_v59  ;;  %v1755_v59 = vld [vmem:[%s5299_s9 + $0x198] sm:$0xff]  ;;  %v2925_v49 = vpack.c.bf16 %v1894_v47, %v1892_v46  ;;  %v2815_v46 = vpack.c.bf16 %v1787_v41, %v1785_v40  ;;  %v1786_v47 = vld [vmem:[%s5299_s9 + $0x290] sm:$0xff] }
  0xfb   :  { %2758 = vmatpush1.bf16.msra.mxu1 %v2757_v60  ;;  %2888 = vmatprep.subr.bf16.mxu0 %v2887_v62  ;;  %v2781_v60 = vpack.c.bf16 %v1750_v56, %v1748_v55  ;;  %v2783_v61 = vpack.c.bf16 %v1755_v59, %v1753_v57  ;;  %v1752_v62 = vld [vmem:[%s5299_s9 + $0x180] sm:$0xff]  ;;  %v1915_v40 = vld [vmem:[%s5299_s9 + $0x698] sm:$0xff] }
  0xfc   :  { %2760 = vmatprep.subr.bf16.mxu1 %v2759_v1  ;;  %v1759_v1 = vld [vmem:[%s5299_s9 + $0x1b8] sm:$0xff]  ;;  %v2785_v2 = vpack.c.bf16 %v1754_v63, %v1752_v62  ;;  %v1646_v57 = vld [vmem:[%s5300_s8] sm:$0xff] }
  0xfd   :  { %v2787_v4 = vpack.c.bf16 %v1759_v1, %v1757_v0 }
  0xfe   :  { %2890 = vmatpush1.bf16.msra.mxu0 %v2889_v8  ;;  %v1763_v8 = vld [vmem:[%s5299_s9 + $0x1d8] sm:$0xff] }
  0xff   :  { %2762 = vmatpush1.bf16.msra.mxu1 %v2761_v9  ;;  %2892 = vmatprep.subr.bf16.mxu0 %v2891_v11  ;;  %v2789_v9 = vpack.c.bf16 %v1758_v6, %v1756_v5  ;;  %v2791_v10 = vpack.c.bf16 %v1763_v8, %v1761_v7  ;;  %v1760_v11 = vld [vmem:[%s5299_s9 + $0x1c0] sm:$0xff]  ;;  %v1770_v8 = vld [vmem:[%s5299_s9 + $0x210] sm:$0xff] }
 0x100   :  { %2764 = vmatprep.subr.bf16.mxu1 %v2763_v14  ;;  %v2793_v13 = vpack.c.bf16 %v1762_v12, %v1760_v11  ;;  %v1765_v14 = vld [vmem:[%s5299_s9 + $0x1e8] sm:$0xff]  ;;  %v1768_v7 = vld [vmem:[%s5299_s9 + $0x200] sm:$0xff] }
 0x101   :  { %v2795_v18 = vpack.c.bf16 %v1767_v16, %v1765_v14  ;;  %v1773_v12 = vld [vmem:[%s5299_s9 + $0x228] sm:$0xff] }
 0x102   :  { %2894 = vmatpush1.bf16.msra.mxu0 %v2893_v20  ;;  %v1766_v20 = vld [vmem:[%s5299_s9 + $0x1f0] sm:$0xff] }
 0x103   :  { %2766 = vmatpush1.bf16.msra.mxu1 %v2765_v21  ;;  %2896 = vmatprep.subr.bf16.mxu0 %v2895_v23  ;;  %v2907_v21 = vpack.c.bf16 %v1879_v15, %v1877_v17  ;;  %v2797_v22 = vpack.c.bf16 %v1766_v20, %v1764_v19  ;;  %v1876_v23 = vld [vmem:[%s5299_s9 + $0x560] sm:$0xff]  ;;  %v2801_v17 = vpack.c.bf16 %v1770_v8, %v1768_v7  ;;  %v1774_v20 = vld [vmem:[%s5299_s9 + $0x230] sm:$0xff] }
 0x104   :  { %2768 = vmatprep.subr.bf16.mxu1 %v2767_v26  ;;  %v2909_v25 = vpack.c.bf16 %v1878_v24, %v1876_v23  ;;  %v1769_v26 = vld [vmem:[%s5299_s9 + $0x208] sm:$0xff]  ;;  %v1772_v19 = vld [vmem:[%s5299_s9 + $0x220] sm:$0xff]  ;;  %v1779_v23 = vld [vmem:[%s5299_s9 + $0x258] sm:$0xff] }
 0x105   :  { %v2799_v29 = vpack.c.bf16 %v1771_v27, %v1769_v26  ;;  %v2805_v24 = vpack.c.bf16 %v1774_v20, %v1772_v19  ;;  %v1776_v26 = vld [vmem:[%s5299_s9 + $0x240] sm:$0xff]  ;;  %v1778_v27 = vld [vmem:[%s5299_s9 + $0x250] sm:$0xff] }
 0x106   :  { %2898 = vmatpush1.bf16.msra.mxu0 %v2897_v32  ;;  %v1880_v32 = vld [vmem:[%s5299_s9 + $0x580] sm:$0xff] }
 0x107   :  { %2770 = vmatpush1.bf16.msra.mxu1 %v2769_v33  ;;  %2900 = vmatprep.subr.bf16.mxu0 %v2899_v35  ;;  %v1882_v33 = vld [vmem:[%s5299_s9 + $0x590] sm:$0xff]  ;;  %v1885_v35 = vld [vmem:[%s5299_s9 + $0x5a8] sm:$0xff]  ;;  %v1792_v20 = vld [vmem:[%s5299_s9 + $0x2c0] sm:$0xff] }
 0x108   :  { %2772 = vmatprep.subr.bf16.mxu1 %v2771_v48  ;;  %v2913_v34 = vpack.c.bf16 %v1882_v33, %v1880_v32  ;;  %v2915_v37 = vpack.c.bf16 %v1887_v36, %v1885_v35  ;;  %v1884_v48 = vld [vmem:[%s5299_s9 + $0x5a0] sm:$0xff]  ;;  %v1783_v32 = vld [vmem:[%s5299_s9 + $0x278] sm:$0xff] }
 0x109   :  { %v2917_v39 = vpack.c.bf16 %v1886_v38, %v1884_v48  ;;  %v1782_v48 = vld [vmem:[%s5299_s9 + $0x270] sm:$0xff] }
 0x10a   :  { %2902 = vmatpush1.bf16.msra.mxu0 %v2901_v42  ;;  %v1888_v42 = vld [vmem:[%s5299_s9 + $0x5c0] sm:$0xff] }
 0x10b   :  { %2774 = vmatpush1.bf16.msra.mxu1 %v2773_v43  ;;  %2904 = vmatprep.subr.bf16.mxu0 %v2903_v3  ;;  %v1890_v43 = vld [vmem:[%s5299_s9 + $0x5d0] sm:$0xff] }
 0x10c   :  { %2776 = vmatprep.subr.bf16.mxu1 %v2775_v58  ;;  %v2921_v3 = vpack.c.bf16 %v1890_v43, %v1888_v42  ;;  %v2923_v58 = vpack.c.bf16 %v1895_v45, %v1893_v44 }
 0x10e   :  { %2906 = vmatpush1.bf16.msra.mxu0 %v2905_v51  ;;  %v1899_v51 = vld [vmem:[%s5299_s9 + $0x618] sm:$0xff] }
 0x10f   :  { %2778 = vmatpush1.bf16.msra.mxu1 %v2777_v52  ;;  %2908 = vmatprep.subr.bf16.mxu0 %v2907_v21  ;;  %v2927_v52 = vpack.c.bf16 %v1899_v51, %v1897_v50  ;;  %v1898_v50 = vld [vmem:[%s5299_s9 + $0x610] sm:$0xff] }
 0x110   :  { %2780 = vmatprep.subr.bf16.mxu1 %v2779_v54  ;;  %v1648_v54 = vlaneseq }
 0x112   :  { %2910 = vmatpush1.bf16.msra.mxu0 %v2909_v25  ;;  %v4884_v55 = vshrl.u32 %v1648_v54, 7  ;;  %vm2276_vm1 = vcmp.lt.s32.totalorder %v1648_v54, 256 }
 0x113   :  { %2782 = vmatpush1.bf16.msra.mxu1 %v2781_v60  ;;  %2912 = vmatprep.subr.bf16.mxu0 %v2911_v31  ;;  %v1781_v31 = vld [vmem:[%s5299_s9 + $0x268] sm:$0xff] }
 0x114   :  { %2784 = vmatprep.subr.bf16.mxu1 %v2783_v61  ;;  %v1650_v56 = vsub.s32 0, %v4884_v55  ;;  %v1658_v59 = vsub.s32 2, %v4884_v55  ;;  %v1654_v60 = vsub.s32 1, %v4884_v55  ;;  %v1662_v61 = vsub.s32 3, %v4884_v55 }
 0x115   :  { %v1666_v28 = vsub.s32 4, %v4884_v55  ;;  %v1670_v30 = vsub.s32 5, %v4884_v55  ;;  %v1678_v33 = vsub.s32 7, %v4884_v55  ;;  %v2811_v36 = vpack.c.bf16 %v1783_v32, %v1781_v31  ;;  %v1796_v32 = vld [vmem:[%s5299_s9 + $0x2e0] sm:$0xff] }
 0x116   :  { %2914 = vmatpush1.bf16.msra.mxu0 %v2913_v34  ;;  %v1651_v62 = vrot.slane %v1646_v57, %v1650_v56  ;;  %v1659_v63 = vrot.slane %v1646_v57, %v1658_v59  ;;  %v1655_v0 = vrot.slane %v1646_v57, %v1654_v60  ;;  %v1663_v1 = vrot.slane %v1646_v57, %v1662_v61  ;;  %v1789_v59 = vld [vmem:[%s5299_s9 + $0x2a8] sm:$0xff]  ;;  %v1791_v61 = vld [vmem:[%s5299_s9 + $0x2b8] sm:$0xff] }
 0x117   :  { %2786 = vmatpush1.bf16.msra.mxu1 %v2785_v2  ;;  %2916 = vmatprep.subr.bf16.mxu0 %v2915_v37  ;;  %v2809_v34 = vpack.c.bf16 %v1778_v27, %v1776_v26  ;;  %v1667_v35 = vrot.slane %v1646_v57, %v1666_v28  ;;  %v1780_v37 = vld [vmem:[%s5299_s9 + $0x260] sm:$0xff]  ;;  %v2819_v8 = vpack.c.bf16 %v1791_v61, %v1789_v59  ;;  %v1797_v26 = vld [vmem:[%s5299_s9 + $0x2e8] sm:$0xff]  ;;  %v1799_v27 = vld [vmem:[%s5299_s9 + $0x2f8] sm:$0xff] }
 0x118   :  { %2788 = vmatprep.subr.bf16.mxu1 %v2787_v4  ;;  %v2813_v43 = vpack.c.bf16 %v1782_v48, %v1780_v37  ;;  %v1909_v28 = vld [vmem:[%s5299_s9 + $0x668] sm:$0xff]  ;;  %v1910_v37 = vld [vmem:[%s5299_s9 + $0x670] sm:$0xff]  ;;  %v1804_v59 = vld [vmem:[%s5299_s9 + $0x320] sm:$0xff] }
 0x119   :  { %v1801_v48 = vld [vmem:[%s5299_s9 + $0x308] sm:$0xff]  ;;  %v1806_v61 = vld [vmem:[%s5299_s9 + $0x330] sm:$0xff] }
 0x11a   :  { %2918 = vmatpush1.bf16.msra.mxu0 %v2917_v39  ;;  %v1671_v39 = vrot.slane %v1646_v57, %v1670_v30 }
 0x11b   :  { %2790 = vmatpush1.bf16.msra.mxu1 %v2789_v9  ;;  %2920 = vmatprep.subr.bf16.mxu0 %v2919_v53  ;;  %v1679_v53 = vrot.slane %v1646_v57, %v1678_v33  ;;  %v1798_v33 = vld [vmem:[%s5299_s9 + $0x2f0] sm:$0xff] }
 0x11c   :  { %2792 = vmatprep.subr.bf16.mxu1 %v2791_v10  ;;  %v2829_v41 = vpack.c.bf16 %v1798_v33, %v1796_v32 }
 0x11e   :  { %2922 = vmatpush1.bf16.msra.mxu0 %v2921_v3  ;;  %v1784_v3 = vld [vmem:[%s5299_s9 + $0x280] sm:$0xff] }
 0x11f   :  { %2794 = vmatpush1.bf16.msra.mxu1 %v2793_v13  ;;  %2924 = vmatprep.subr.bf16.mxu0 %v2923_v58  ;;  %v1775_v13 = vld [vmem:[%s5299_s9 + $0x238] sm:$0xff] }
 0x120   :  { %2796 = vmatprep.subr.bf16.mxu1 %v2795_v18  ;;  %v2803_v15 = vpack.c.bf16 %v1775_v13, %v1773_v12  ;;  %v1793_v12 = vld [vmem:[%s5299_s9 + $0x2c8] sm:$0xff] }
 0x122   :  { %2926 = vmatpush1.bf16.msra.mxu0 %v2925_v49  ;;  %v1896_v49 = vld [vmem:[%s5299_s9 + $0x600] sm:$0xff] }
 0x123   :  { %2798 = vmatpush1.bf16.msra.mxu1 %v2797_v22  ;;  %2928 = vmatprep.subr.bf16.mxu0 %v2927_v52  ;;  %v1777_v22 = vld [vmem:[%s5299_s9 + $0x248] sm:$0xff] }
 0x124   :  { %2800 = vmatprep.subr.bf16.mxu1 %v2799_v29  ;;  %v2807_v25 = vpack.c.bf16 %v1779_v23, %v1777_v22  ;;  %v1674_v29 = vsub.s32 6, %v4884_v55 }
 0x126   :  { %v1675_v38 = vrot.slane %v1646_v57, %v1674_v29  ;;  %v1911_v29 = vld [vmem:[%s5299_s9 + $0x678] sm:$0xff] }
 0x1a8   :  { %v1420_v2 = vpop.f32.mrb[0].mxu0 }
 0x1a9   :  { %v1688_v4 = vadd.f32 %v1651_v62, %v1420_v2  ;;  %v1491_v5 = vpop.f32.mrb[0].mxu1  ;;  %v1422_v6 = vpop.f32.mrb[1].mxu0  ;;  %v2817_v2 = vpack.c.bf16 %v1786_v47, %v1784_v3  ;;  %v1807_v47 = vld [vmem:[%s5299_s9 + $0x338] sm:$0xff] }
 0x1aa   :  { %v4903_v9 = vadd.f32 %v1659_v63, %v1491_v5  ;;  %v1689_v10 = vadd.f32 %v1655_v0, %v1422_v6  ;;  %v1493_v11 = vpop.f32.mrb[1].mxu1  ;;  %v1901_v63 = vld [vmem:[%s5299_s9 + $0x628] sm:$0xff]  ;;  %v1903_v0 = vld [vmem:[%s5299_s9 + $0x638] sm:$0xff]  ;;  %v1788_v5 = vld [vmem:[%s5299_s9 + $0x2a0] sm:$0xff] }
 0x1ab   :  { %v1691_v14 = vadd.f32 %v1663_v1, %v1493_v11  ;;  %v1696_v18 = vmax.f32 %v1688_v4, 0.0  ;;  %v2929_v4 = vpack.c.bf16 %v1898_v50, %v1896_v49  ;;  %v1790_v6 = vld [vmem:[%s5299_s9 + $0x2b0] sm:$0xff]  ;;  %v2931_v13 = vpack.c.bf16 %v1903_v0, %v1901_v63  ;;  %v1917_v49 = vld [vmem:[%s5299_s9 + $0x6a8] sm:$0xff]  ;;  %v1919_v50 = vld [vmem:[%s5299_s9 + $0x6b8] sm:$0xff] }
 0x1ac   :  { %v1697_v16 = vmax.f32 %v1689_v10, 0.0  ;;  %v1900_v10 = vld [vmem:[%s5299_s9 + $0x620] sm:$0xff]  ;;  %v1902_v11 = vld [vmem:[%s5299_s9 + $0x630] sm:$0xff]  ;;  %v2947_v63 = vpack.c.bf16 %v1919_v50, %v1917_v49  ;;  %v1825_v49 = vld [vmem:[%s5299_s9 + $0x3c8] sm:$0xff] }
 0x1ad   :  { %v1699_v21 = vmax.f32 %v1691_v14, 0.0  ;;  %v1795_v14 = vld [vmem:[%s5299_s9 + $0x2d8] sm:$0xff]  ;;  %v2933_v19 = vpack.c.bf16 %v1902_v11, %v1900_v10  ;;  %v1916_v0 = vld [vmem:[%s5299_s9 + $0x6a0] sm:$0xff]  ;;  %v1810_v11 = vld [vmem:[%s5299_s9 + $0x350] sm:$0xff] }
 0x1ae   :  { %2036 = vmatprep.mubr.f32.mxu1 %v1697_v16  ;;  %v1905_v16 = vld [vmem:[%s5299_s9 + $0x648] sm:$0xff]  ;;  %v2823_v22 = vpack.c.bf16 %v1795_v14, %v1793_v12  ;;  %v1808_v10 = vld [vmem:[%s5299_s9 + $0x340] sm:$0xff]  ;;  %v1827_v50 = vld [vmem:[%s5299_s9 + $0x3d8] sm:$0xff] }
 0x1af   :  { %2037 = vmatmul.mubr.f32.vlgmr.msra.gmra.mrb[4].mxu1 %v1696_v18  ;;  %v1920_v14 = vld [vmem:[%s5299_s9 + $0x6c0] sm:$0xff] }
 0x1b0   :  { %2802 = vmatpush1.bf16.msra.mxu1 %v2801_v17  ;;  %2107 = vmatprep.mubr.f32.mxu1 %v1699_v21  ;;  %v1907_v17 = vld [vmem:[%s5299_s9 + $0x658] sm:$0xff]  ;;  %v1794_v21 = vld [vmem:[%s5299_s9 + $0x2d0] sm:$0xff] }
 0x1b1   :  { %2804 = vmatprep.subr.bf16.mxu1 %v2803_v15  ;;  %v2821_v15 = vpack.c.bf16 %v1790_v6, %v1788_v5  ;;  %v2935_v23 = vpack.c.bf16 %v1907_v17, %v1905_v16  ;;  %v2825_v30 = vpack.c.bf16 %v1794_v21, %v1792_v20  ;;  %v1921_v5 = vld [vmem:[%s5299_s9 + $0x6c8] sm:$0xff]  ;;  %v1923_v6 = vld [vmem:[%s5299_s9 + $0x6d8] sm:$0xff]  ;;  %v1922_v16 = vld [vmem:[%s5299_s9 + $0x6d0] sm:$0xff]  ;;  %v2841_v20 = vpack.c.bf16 %v1810_v11, %v1808_v10 }
 0x1b2   :  { %v1813_v17 = vld [vmem:[%s5299_s9 + $0x368] sm:$0xff]  ;;  %v2953_v21 = vpack.c.bf16 %v1922_v16, %v1920_v14  ;;  %v1830_v16 = vld [vmem:[%s5299_s9 + $0x3f0] sm:$0xff] }
 0x1b4   :  { %2806 = vmatpush1.bf16.msra.mxu1 %v2805_v24  ;;  %v1904_v24 = vld [vmem:[%s5299_s9 + $0x640] sm:$0xff] }
 0x1b5   :  { %2808 = vmatprep.subr.bf16.mxu1 %v2807_v25  ;;  %v1906_v25 = vld [vmem:[%s5299_s9 + $0x650] sm:$0xff] }
 0x1b6   :  { %v2937_v31 = vpack.c.bf16 %v1906_v25, %v1904_v24 }
 0x1b8   :  { %2810 = vmatpush1.bf16.msra.mxu1 %v2809_v34  ;;  %v1562_v42 = vpop.f32.mrb[2].mxu0  ;;  %v2827_v34 = vpack.c.bf16 %v1799_v27, %v1797_v26  ;;  %v1924_v26 = vld [vmem:[%s5299_s9 + $0x6e0] sm:$0xff]  ;;  %v1926_v27 = vld [vmem:[%s5299_s9 + $0x6f0] sm:$0xff] }
 0x1b9   :  { %v1692_v44 = vadd.f32 %v1667_v35, %v1562_v42  ;;  %v1633_v45 = vpop.f32.mrb[2].mxu1  ;;  %v1564_v58 = vpop.f32.mrb[3].mxu0  ;;  %2812 = vmatprep.subr.bf16.mxu1 %v2811_v36  ;;  %v2939_v35 = vpack.c.bf16 %v1911_v29, %v1909_v28  ;;  %v1908_v36 = vld [vmem:[%s5299_s9 + $0x660] sm:$0xff]  ;;  %v1817_v28 = vld [vmem:[%s5299_s9 + $0x388] sm:$0xff]  ;;  %v1819_v29 = vld [vmem:[%s5299_s9 + $0x398] sm:$0xff]  ;;  %v2957_v33 = vpack.c.bf16 %v1926_v27, %v1924_v26 }
 0x1ba   :  { %v4963_v51 = vadd.f32 %v1675_v38, %v1633_v45  ;;  %v1693_v52 = vadd.f32 %v1671_v39, %v1564_v58  ;;  %v1635_v57 = vpop.f32.mrb[3].mxu1  ;;  %v1803_v38 = vld [vmem:[%s5299_s9 + $0x318] sm:$0xff]  ;;  %v1913_v39 = vld [vmem:[%s5299_s9 + $0x688] sm:$0xff]  ;;  %v1800_v42 = vld [vmem:[%s5299_s9 + $0x300] sm:$0xff] }
 0x1bb   :  { %v1695_v62 = vadd.f32 %v1679_v53, %v1635_v57  ;;  %v1700_v7 = vmax.f32 %v1692_v44, 0.0  ;;  %v2941_v53 = vpack.c.bf16 %v1910_v37, %v1908_v36  ;;  %v2831_v3 = vpack.c.bf16 %v1803_v38, %v1801_v48  ;;  %v1912_v45 = vld [vmem:[%s5299_s9 + $0x680] sm:$0xff]  ;;  %v1914_v58 = vld [vmem:[%s5299_s9 + $0x690] sm:$0xff]  ;;  %v1951_v26 = vld [vmem:[%s5299_s9 + $0x7b8] sm:$0xff] }
 0x1bc   :  { %v1701_v1 = vmax.f32 %v1693_v52, 0.0  ;;  %2814 = vmatpush1.bf16.msra.mxu1 %v2813_v43  ;;  %v1802_v43 = vld [vmem:[%s5299_s9 + $0x310] sm:$0xff]  ;;  %v2943_v44 = vpack.c.bf16 %v1915_v40, %v1913_v39  ;;  %v2945_v57 = vpack.c.bf16 %v1914_v58, %v1912_v45  ;;  %v2847_v36 = vpack.c.bf16 %v1819_v29, %v1817_v28  ;;  %v1928_v48 = vld [vmem:[%s5299_s9 + $0x700] sm:$0xff]  ;;  %v1821_v39 = vld [vmem:[%s5299_s9 + $0x3a8] sm:$0xff] }
 0x1bd   :  { %2816 = vmatprep.subr.bf16.mxu1 %v2815_v46  ;;  %v1703_v18 = vmax.f32 %v1695_v62, 0.0  ;;  %v1805_v46 = vld [vmem:[%s5299_s9 + $0x328] sm:$0xff]  ;;  %v2833_v52 = vpack.c.bf16 %v1802_v43, %v1800_v42  ;;  %v1930_v38 = vld [vmem:[%s5299_s9 + $0x710] sm:$0xff]  ;;  %v1823_v40 = vld [vmem:[%s5299_s9 + $0x3b8] sm:$0xff]  ;;  %v1698_v28 = vmax.f32 %v4903_v9, 0.0 }
 0x1be   :  { %2178 = vmatprep.mubr.f32.mxu0 %v1701_v1  ;;  %v2835_v62 = vpack.c.bf16 %v1807_v47, %v1805_v46  ;;  %v1918_v1 = vld [vmem:[%s5299_s9 + $0x6b0] sm:$0xff]  ;;  %v2961_v43 = vpack.c.bf16 %v1930_v38, %v1928_v48  ;;  %v2851_v45 = vpack.c.bf16 %v1823_v40, %v1821_v39  ;;  %v1932_v46 = vld [vmem:[%s5299_s9 + $0x720] sm:$0xff]  ;;  %v1959_v48 = vld [vmem:[%s5299_s9 + $0x7f8] sm:$0xff] }
 0x1bf   :  { %2179 = vmatmul.mubr.f32.vlgmr.msra.gmra.mrb[4].mxu0 %v1700_v7  ;;  %v2837_v7 = vpack.c.bf16 %v1806_v61, %v1804_v59  ;;  %v1934_v47 = vld [vmem:[%s5299_s9 + $0x730] sm:$0xff]  ;;  %v1956_v40 = vld [vmem:[%s5299_s9 + $0x7e0] sm:$0xff] }
 0x1c0   :  { %2818 = vmatpush1.bf16.msra.mxu1 %v2817_v2  ;;  %2930 = vmatpush1.bf16.msra.mxu0 %v2929_v4  ;;  %v1809_v2 = vld [vmem:[%s5299_s9 + $0x348] sm:$0xff]  ;;  %v1811_v4 = vld [vmem:[%s5299_s9 + $0x358] sm:$0xff]  ;;  %v2965_v61 = vpack.c.bf16 %v1934_v47, %v1932_v46 }
 0x1c1   :  { %2249 = vmatprep.mubr.f32.mxu0 %v1703_v18  ;;  %2820 = vmatprep.subr.bf16.mxu1 %v2819_v8  ;;  %v2949_v8 = vpack.c.bf16 %v1918_v1, %v1916_v0  ;;  %v2839_v12 = vpack.c.bf16 %v1811_v4, %v1809_v2  ;;  %v1815_v18 = vld [vmem:[%s5299_s9 + $0x378] sm:$0xff]  ;;  %v2855_v0 = vpack.c.bf16 %v1827_v50, %v1825_v49  ;;  %v1936_v2 = vld [vmem:[%s5299_s9 + $0x740] sm:$0xff]  ;;  %v1938_v4 = vld [vmem:[%s5299_s9 + $0x750] sm:$0xff] }
 0x1c2   :  { %2932 = vmatprep.subr.bf16.mxu0 %v2931_v13  ;;  %v2951_v13 = vpack.c.bf16 %v1923_v6, %v1921_v5  ;;  %v2843_v24 = vpack.c.bf16 %v1815_v18, %v1813_v17  ;;  %v1829_v5 = vld [vmem:[%s5299_s9 + $0x3e8] sm:$0xff]  ;;  %v1831_v6 = vld [vmem:[%s5299_s9 + $0x3f8] sm:$0xff]  ;;  %v2969_v11 = vpack.c.bf16 %v1938_v4, %v1936_v2  ;;  %v1940_v17 = vld [vmem:[%s5299_s9 + $0x760] sm:$0xff] }
 0x1c3   :  { %v1942_v18 = vld [vmem:[%s5299_s9 + $0x770] sm:$0xff] }
 0x1c4   :  { %2822 = vmatpush1.bf16.msra.mxu1 %v2821_v15  ;;  %2934 = vmatpush1.bf16.msra.mxu0 %v2933_v19  ;;  %v1925_v15 = vld [vmem:[%s5299_s9 + $0x6e8] sm:$0xff]  ;;  %v1927_v19 = vld [vmem:[%s5299_s9 + $0x6f8] sm:$0xff] }
 0x1c5   :  { %2824 = vmatprep.subr.bf16.mxu1 %v2823_v22  ;;  %2936 = vmatprep.subr.bf16.mxu0 %v2935_v23  ;;  %v1812_v22 = vld [vmem:[%s5299_s9 + $0x360] sm:$0xff]  ;;  %v1814_v23 = vld [vmem:[%s5299_s9 + $0x370] sm:$0xff]  ;;  %v2955_v25 = vpack.c.bf16 %v1927_v19, %v1925_v15  ;;  %v1945_v15 = vld [vmem:[%s5299_s9 + $0x788] sm:$0xff] }
 0x1c6   :  { %v2845_v32 = vpack.c.bf16 %v1814_v23, %v1812_v22  ;;  %v1947_v19 = vld [vmem:[%s5299_s9 + $0x798] sm:$0xff]  ;;  %v1944_v23 = vld [vmem:[%s5299_s9 + $0x780] sm:$0xff] }
 0x1c7   :  { %v2975_v22 = vpack.c.bf16 %v1947_v19, %v1945_v15 }
 0x1c8   :  { %2826 = vmatpush1.bf16.msra.mxu1 %v2825_v30  ;;  %2938 = vmatpush1.bf16.msra.mxu0 %v2937_v31  ;;  %v1929_v30 = vld [vmem:[%s5299_s9 + $0x708] sm:$0xff]  ;;  %v1931_v31 = vld [vmem:[%s5299_s9 + $0x718] sm:$0xff] }
 0x1c9   :  { %2828 = vmatprep.subr.bf16.mxu1 %v2827_v34  ;;  %2940 = vmatprep.subr.bf16.mxu0 %v2939_v35  ;;  %v1816_v34 = vld [vmem:[%s5299_s9 + $0x380] sm:$0xff]  ;;  %v1818_v35 = vld [vmem:[%s5299_s9 + $0x390] sm:$0xff]  ;;  %v2959_v37 = vpack.c.bf16 %v1931_v31, %v1929_v30 }
 0x1ca   :  { %v2849_v42 = vpack.c.bf16 %v1818_v35, %v1816_v34  ;;  %v1948_v30 = vld [vmem:[%s5299_s9 + $0x7a0] sm:$0xff]  ;;  %v1950_v31 = vld [vmem:[%s5299_s9 + $0x7b0] sm:$0xff] }
 0x1cb   :  { %v2981_v9 = vpack.c.bf16 %v1950_v31, %v1948_v30  ;;  %v1952_v35 = vld [vmem:[%s5299_s9 + $0x7c0] sm:$0xff] }
 0x1cc   :  { %2830 = vmatpush1.bf16.msra.mxu1 %v2829_v41  ;;  %2942 = vmatpush1.bf16.msra.mxu0 %v2941_v53  ;;  %v1933_v41 = vld [vmem:[%s5299_s9 + $0x728] sm:$0xff]  ;;  %v1935_v53 = vld [vmem:[%s5299_s9 + $0x738] sm:$0xff] }
 0x1cd   :  { %2832 = vmatprep.subr.bf16.mxu1 %v2831_v3  ;;  %2944 = vmatprep.subr.bf16.mxu0 %v2943_v44  ;;  %v1820_v3 = vld [vmem:[%s5299_s9 + $0x3a0] sm:$0xff]  ;;  %v1822_v44 = vld [vmem:[%s5299_s9 + $0x3b0] sm:$0xff]  ;;  %v2963_v58 = vpack.c.bf16 %v1935_v53, %v1933_v41 }
 0x1ce   :  { %v2853_v59 = vpack.c.bf16 %v1822_v44, %v1820_v3  ;;  %v1958_v41 = vld [vmem:[%s5299_s9 + $0x7f0] sm:$0xff]  ;;  %v1960_v44 = vld [vmem:[%s5301_s10] sm:$0x3] }
 0x1cf   :  { %v2989_v53 = vpack.c.bf16 %v1958_v41, %v1956_v40  ;;  %v1965_v46 = vrot.slane %v1960_v44, %v1650_v56  ;;  %v1969_v47 = vrot.slane %v1960_v44, %v1654_v60 }
 0x1d0   :  { %2834 = vmatpush1.bf16.msra.mxu1 %v2833_v52  ;;  %2946 = vmatpush1.bf16.msra.mxu0 %v2945_v57  ;;  %v1937_v52 = vld [vmem:[%s5299_s9 + $0x748] sm:$0xff]  ;;  %v1939_v57 = vld [vmem:[%s5299_s9 + $0x758] sm:$0xff] }
 0x1d1   :  { %2836 = vmatprep.subr.bf16.mxu1 %v2835_v62  ;;  %2948 = vmatprep.subr.bf16.mxu0 %v2947_v63  ;;  %v1824_v62 = vld [vmem:[%s5299_s9 + $0x3c0] sm:$0xff]  ;;  %v1826_v63 = vld [vmem:[%s5299_s9 + $0x3d0] sm:$0xff]  ;;  %v2967_v1 = vpack.c.bf16 %v1939_v57, %v1937_v52 }
 0x1d2   :  { %v2857_v10 = vpack.c.bf16 %v1826_v63, %v1824_v62 }
 0x1d4   :  { %2838 = vmatpush1.bf16.msra.mxu1 %v2837_v7  ;;  %2950 = vmatpush1.bf16.msra.mxu0 %v2949_v8  ;;  %v1941_v7 = vld [vmem:[%s5299_s9 + $0x768] sm:$0xff]  ;;  %v1943_v8 = vld [vmem:[%s5299_s9 + $0x778] sm:$0xff] }
 0x1d5   :  { %2840 = vmatprep.subr.bf16.mxu1 %v2839_v12  ;;  %2952 = vmatprep.subr.bf16.mxu0 %v2951_v13  ;;  %v1828_v12 = vld [vmem:[%s5299_s9 + $0x3e0] sm:$0xff]  ;;  %v2859_v13 = vpack.c.bf16 %v1831_v6, %v1829_v5  ;;  %v2971_v14 = vpack.c.bf16 %v1943_v8, %v1941_v7 }
 0x1d8   :  { %2842 = vmatpush1.bf16.msra.mxu1 %v2841_v20  ;;  %2954 = vmatpush1.bf16.msra.mxu0 %v2953_v21  ;;  %v2861_v20 = vpack.c.bf16 %v1830_v16, %v1828_v12  ;;  %v2973_v21 = vpack.c.bf16 %v1942_v18, %v1940_v17 }
 0x1d9   :  { %2844 = vmatprep.subr.bf16.mxu1 %v2843_v24  ;;  %2956 = vmatprep.subr.bf16.mxu0 %v2955_v25  ;;  %v1946_v24 = vld [vmem:[%s5299_s9 + $0x790] sm:$0xff]  ;;  %v1949_v25 = vld [vmem:[%s5299_s9 + $0x7a8] sm:$0xff] }
 0x1da   :  { %v2977_v27 = vpack.c.bf16 %v1946_v24, %v1944_v23  ;;  %v2979_v29 = vpack.c.bf16 %v1951_v26, %v1949_v25 }
 0x1dc   :  { %2846 = vmatpush1.bf16.msra.mxu1 %v2845_v32  ;;  %2958 = vmatpush1.bf16.msra.mxu0 %v2957_v33  ;;  %v1953_v32 = vld [vmem:[%s5299_s9 + $0x7c8] sm:$0xff]  ;;  %v1955_v33 = vld [vmem:[%s5299_s9 + $0x7d8] sm:$0xff] }
 0x1dd   :  { %2848 = vmatprep.subr.bf16.mxu1 %v2847_v36  ;;  %2960 = vmatprep.subr.bf16.mxu0 %v2959_v37  ;;  %v2983_v34 = vpack.c.bf16 %v1955_v33, %v1953_v32  ;;  %v1954_v36 = vld [vmem:[%s5299_s9 + $0x7d0] sm:$0xff]  ;;  %v1957_v37 = vld [vmem:[%s5299_s9 + $0x7e8] sm:$0xff] }
 0x1de   :  { %v2985_v38 = vpack.c.bf16 %v1954_v36, %v1952_v35  ;;  %v2987_v39 = vpack.c.bf16 %v1959_v48, %v1957_v37 }
 0x1e0   :  { %2850 = vmatpush1.bf16.msra.mxu1 %v2849_v42  ;;  %2962 = vmatpush1.bf16.msra.mxu0 %v2961_v43  ;;  %v1702_v42 = vmax.f32 %v4963_v51, 0.0 }
 0x1e1   :  { %2852 = vmatprep.subr.bf16.mxu1 %v2851_v45  ;;  %2964 = vmatprep.subr.bf16.mxu0 %v2963_v58  ;;  %v3026_v45 = vmov 1966171168  }
 0x1e2   :  { %v2260_v58 = vunpack.c.l.s4 %v3026_v45 }
 0x1e4   :  { %2854 = vmatpush1.bf16.msra.mxu1 %v2853_v59  ;;  %2966 = vmatpush1.bf16.msra.mxu0 %v2965_v61  ;;  %v2261_v49 = vunpack.c.0.s8 %v2260_v58 }
 0x1e5   :  { %2856 = vmatprep.subr.bf16.mxu1 %v2855_v0  ;;  %2968 = vmatprep.subr.bf16.mxu0 %v2967_v1 }
 0x1e6   :  { %v2264_v62 = vsub.s32 %v2261_v49, %v4884_v55 }
 0x1e8   :  { %2858 = vmatpush1.bf16.msra.mxu1 %v2857_v10  ;;  %2970 = vmatpush1.bf16.msra.mxu0 %v2969_v11 }
 0x1e9   :  { %2860 = vmatprep.subr.bf16.mxu1 %v2859_v13  ;;  %2972 = vmatprep.subr.bf16.mxu0 %v2971_v14 }
 0x1ec   :  { %2862 = vmatpush1.bf16.msra.mxu1 %v2861_v20  ;;  %2974 = vmatpush1.bf16.msra.mxu0 %v2973_v21 }
 0x1ed   :  { %2976 = vmatprep.subr.bf16.mxu0 %v2975_v22 }
 0x1ef   :  { %2108 = vmatmul.mubr.f32.vlgmr.msra.gmra.mrb[4].mxu1 %v1698_v28 }
 0x1f0   :  { %2978 = vmatpush1.bf16.msra.mxu0 %v2977_v27 }
 0x1f1   :  { %2980 = vmatprep.subr.bf16.mxu0 %v2979_v29 }
 0x1f4   :  { %2982 = vmatpush1.bf16.msra.mxu0 %v2981_v9 }
 0x1f5   :  { %2984 = vmatprep.subr.bf16.mxu0 %v2983_v34 }
 0x1f8   :  { %2986 = vmatpush1.bf16.msra.mxu0 %v2985_v38 }
 0x1f9   :  { %2988 = vmatprep.subr.bf16.mxu0 %v2987_v39 }
 0x1fc   :  { %2990 = vmatpush1.bf16.msra.mxu0 %v2989_v53 }
 0x1ff   :  { %2250 = vmatmul.mubr.f32.vlgmr.msra.gmra.mrb[4].mxu0 %v1702_v42 }
 0x2c2   :  { %v2109_v43 = vpop.f32.mrb[4].mxu1 }
 0x2c3   :  { %v2111_v3 = vpop.f32.mrb[5].mxu1  ;;  %v2991_v50 = vadd.f32 %v2109_v43, %v1965_v46 }
 0x2c4   :  { %v2993_v52 = vadd.f32 %v2111_v3, %v1969_v47 }
 0x2d2   :  { %v2251_v57 = vpop.f32.mrb[4].mxu0 }
 0x2d3   :  { %v2992_v51 = vadd.f32 %v2991_v50, %v2251_v57  ;;  %v2253_v59 = vpop.f32.mrb[5].mxu0 }
 0x2d4   :  { %v2994_v61 = vadd.f32 %v2993_v52, %v2253_v59 }
 0x2d6   :  { %v2258_v63 = vcombine.low %v2992_v51, %v2994_v61 }
 0x2d8   :  { %v2265_v0 = vrot.slane %v2258_v63, %v2264_v62 }
 0x2da   :  { %v2272_v1 = vrot.slane %v2265_v0, %v2264_v62 }
 0x2dc   :  { %2278 = vst.msk [vmem:[%s5302_s11] sm:$0x3] %vm2276_vm1, %v2272_v1 }

</bundles_post_ra>
